<compile_context>
chip_gen: v5e
topology: v5e:2x2
jax: 0.10.0
libtpu: 0.0.40
codegen_flags: <defaults>
</compile_context>

<pallas_src>
import functools

import jax
import jax.numpy as jnp
from jax.experimental import pallas as pl
from jax.experimental.pallas import tpu as pltpu


# ----------------------------------------------------------------------------
# Fused CrossAttention kernel (one block of `bb` batch elements per grid step)
# ----------------------------------------------------------------------------

def _cross_attention_kernel(x_ref, ctx_ref, wq_ref, wkv_ref, wproj_ref,
                            bproj_ref, o_ref, *, num_heads):
    """x_ref:(bb,N,C)  ctx_ref:(bb,M,C)  wq:(C,C) (scale pre-folded)
    wkv:(C,2C)  wproj:(C,C)  bproj:(1,C) f32  o_ref:(bb,N,C).
    Weights are (in_features, out_features) == torch weight.T, pre-cast to the
    MXU compute dtype."""
    bb, N, C = x_ref.shape
    M = ctx_ref.shape[1]
    H = num_heads
    hd = C // H
    cdt = wq_ref.dtype                     # MXU operand dtype (bf16 or f32)

    # Flatten the batch block -> projection matmuls see bb*N / bb*M LHS rows.
    x = x_ref[...].reshape(bb * N, C).astype(cdt)
    ctx = ctx_ref[...].reshape(bb * M, C).astype(cdt)

    # Projections (softmax scale already folded into wq); f32 accumulation.
    q = jnp.dot(x, wq_ref[...], preferred_element_type=jnp.float32)      # (bbN, C)
    kv = jnp.dot(ctx, wkv_ref[...], preferred_element_type=jnp.float32)  # (bbM, 2C)

    # torch: kv.reshape(B,M,2,H,hd) -> cols [:C] are k, cols [C:] are v,
    # head h -> cols h*hd:(h+1)*hd.
    k = kv[:, :C]
    v = kv[:, C:]

    # Single relayout to a heads-batched layout (done in f32, then cast):
    # (bb*rows, C) -> (bb*H, rows, hd).  No per-head slicing / concatenation.
    def to_heads(t, rows):
        t = t.reshape(bb, rows, H, hd)
        t = jnp.transpose(t, (0, 2, 1, 3))          # (bb, H, rows, hd)
        return t.reshape(bb * H, rows, hd).astype(cdt)

    q_h = to_heads(q, N)                            # (bb*H, N, hd)
    k_h = to_heads(k, M)                            # (bb*H, M, hd)
    v_h = to_heads(v, M)                            # (bb*H, M, hd)

    # Scores for every (batch, head) pair in one batched MXU matmul (f32).
    s = jnp.einsum("bnd,bmd->bnm", q_h, k_h,
                   preferred_element_type=jnp.float32)          # (bb*H, N, M)

    # Softmax vectorized over all (batch, head, row) at once on one
    # (bb*H*N, M) f32 tile; reciprocal goes to the EUP.
    s2 = s.reshape(bb * H * N, M)
    s2 = s2 - jnp.max(s2, axis=-1, keepdims=True)
    p2 = jnp.exp(s2)
    p2 = p2 * pl.reciprocal(jnp.sum(p2, axis=-1, keepdims=True), approx=True)
    p = p2.reshape(bb * H, N, M).astype(cdt)

    # attn @ v for every (batch, head) in one batched matmul, f32 accumulate.
    o = jnp.einsum("bnm,bmd->bnd", p, v_h,
                   preferred_element_type=jnp.float32)          # (bb*H, N, hd)

    # Back to one lane-dense (bb*N, C) slab with a single relayout.
    o = jnp.transpose(o.reshape(bb, H, N, hd), (0, 2, 1, 3))    # (bb, N, H, hd)
    o = o.reshape(bb * N, C).astype(cdt)

    # Output projection + bias, fused; single lane-dense (bb, N, C) store.
    out = jnp.dot(o, wproj_ref[...], preferred_element_type=jnp.float32)
    out = out + bproj_ref[...]                                  # (1, C) f32 bias
    o_ref[...] = out.reshape(bb, N, C).astype(o_ref.dtype)


def _pick_batch_block(B, N, target_rows=128):
    """Largest divisor bb of B with bb*N <= target_rows, while keeping >= 2
    grid steps whenever B >= 2 (so both v7x TensorCores get work)."""
    min_steps = 2 if B >= 2 else 1
    best = 1
    for bb in range(1, B + 1):
        if B % bb:
            continue
        if bb * N > target_rows:
            break
        if B // bb < min_steps:
            continue
        best = bb
    return best


def cross_attention(x, context, wq, wkv, wproj, bproj, *, num_heads=8,
                    compute_dtype=jnp.bfloat16, batch_block=None):
    """Fused CrossAttention forward.

    x: (B, N, C); context: (B, M, C); weights are (in_features, out_features)
    (i.e. torch nn.Linear weight transposed); bproj: (C,).
    compute_dtype: MXU operand dtype (bf16 recommended on v6e/v7x); all
    accumulation and the softmax math stay in f32.
    """
    B, N, C = x.shape
    Bc, M, Cc = context.shape
    assert B == Bc and C == Cc and C % num_heads == 0
    scale = (C // num_heads) ** (-0.5)

    bb = batch_block if batch_block is not None else _pick_batch_block(B, N)
    assert B % bb == 0, (B, bb)

    # One-time weight prep: fold the softmax scale into wq and cast the MXU
    # operand weights to the compute dtype outside the kernel.
    wq_p = (wq * scale).astype(compute_dtype)
    wkv_p = wkv.astype(compute_dtype)
    wproj_p = wproj.astype(compute_dtype)
    bproj_p = bproj.reshape(1, C).astype(jnp.float32)

    kernel = functools.partial(_cross_attention_kernel, num_heads=num_heads)
    return pl.pallas_call(
        kernel,
        out_shape=jax.ShapeDtypeStruct((B, N, C), x.dtype),
        grid=(B // bb,),
        in_specs=[
            pl.BlockSpec((bb, N, C), lambda b: (b, 0, 0)),   # x block
            pl.BlockSpec((bb, M, C), lambda b: (b, 0, 0)),   # context block
            # Weights/bias: constant index_map -> fetched once, resident
            # across the grid.  (For large C, pipeline_mode=pl.Buffered(1)
            # would additionally drop the unused second buffer.)
            pl.BlockSpec((C, C), lambda b: (0, 0)),          # wq (scale folded)
            pl.BlockSpec((C, 2 * C), lambda b: (0, 0)),      # wkv
            pl.BlockSpec((C, C), lambda b: (0, 0)),          # wproj
            pl.BlockSpec((1, C), lambda b: (0, 0)),          # bproj
        ],
        out_specs=pl.BlockSpec((bb, N, C), lambda b: (b, 0, 0)),
        compiler_params=pltpu.CompilerParams(
            # Batch-block axis is embarrassingly parallel -> megacore sharding
            # on v7x; no-op on v5e/v6e.
            dimension_semantics=("parallel",),
            # Explicit VMEM budget (safe on every generation incl. v7x's
            # 64 MiB physical); re-derive if N/M/C grow beyond toy sizes.
            vmem_limit_bytes=32 * 1024 * 1024,
        ),
    )(x, context, wq_p, wkv_p, wproj_p, bproj_p)


# ----------------------------------------------------------------------------
# Pure-JAX reference (mirrors the PyTorch forward, same weight layout)
# ----------------------------------------------------------------------------

def cross_attention_ref(x, context, wq, wkv, wproj, bproj, *, num_heads):
    B, N, C = x.shape
    M = context.shape[1]
    hd = C // num_heads
    scale = hd ** (-0.5)
    q = x @ wq                                       # (B, N, C)   qkv_bias=False
    kv = context @ wkv                               # (B, M, 2C)
    k, v = kv[..., :C], kv[..., C:]
    q = q.reshape(B, N, num_heads, hd).transpose(0, 2, 1, 3)
    k = k.reshape(B, M, num_heads, hd).transpose(0, 2, 1, 3)
    v = v.reshape(B, M, num_heads, hd).transpose(0, 2, 1, 3)
    attn = jnp.einsum("bhnd,bhmd->bhnm", q, k) * scale
    attn = jax.nn.softmax(attn, axis=-1)             # attn_drop p=0.0 -> identity
    o = jnp.einsum("bhnm,bhmd->bhnd", attn, v)
    o = o.transpose(0, 2, 1, 3).reshape(B, N, C)
    return o @ wproj + bproj                         # proj_drop p=0.0 -> identity


# ----------------------------------------------------------------------------

if __name__ == "__main__":
    B, N, M, C = 2, 8, 16, 64          # small shapes consistent with the module
    num_heads = 8                      # module default -> head_dim = 8

    key = jax.random.PRNGKey(0)
    kx, kc, kq, kkv, kp, kb = jax.random.split(key, 6)
    x = jax.random.normal(kx, (B, N, C), dtype=jnp.float32)
    context = jax.random.normal(kc, (B, M, C), dtype=jnp.float32)
    # Weights stored as (in_features, out_features) == torch weight.T
    wq = 0.1 * jax.random.normal(kq, (C, C), dtype=jnp.float32)
    wkv = 0.1 * jax.random.normal(kkv, (C, 2 * C), dtype=jnp.float32)
    wproj = 0.1 * jax.random.normal(kp, (C, C), dtype=jnp.float32)
    bproj = 0.1 * jax.random.normal(kb, (C,), dtype=jnp.float32)

    ref = cross_attention_ref(x, context, wq, wkv, wproj, bproj,
                              num_heads=num_heads)

    # f32 MXU operands, default batch block -> tight parity with the reference.
    out_f32 = jax.block_until_ready(
        cross_attention(x, context, wq, wkv, wproj, bproj,
                        num_heads=num_heads, compute_dtype=jnp.float32))
    assert out_f32.shape == (B, N, C), out_f32.shape
    assert bool(jnp.all(jnp.isfinite(out_f32)))
    err32 = float(jnp.max(jnp.abs(out_f32 - ref)))
    assert bool(jnp.allclose(out_f32, ref, atol=5e-3, rtol=5e-3)), err32

    # bf16 MXU operands (v6e/v7x-recommended path) with the whole batch merged
    # into one grid step (exercises the row-flattening path); looser tolerance.
    out_bf16 = jax.block_until_ready(
        cross_attention(x, context, wq, wkv, wproj, bproj,
                        num_heads=num_heads, compute_dtype=jnp.bfloat16,
                        batch_block=B))
    assert out_bf16.shape == (B, N, C), out_bf16.shape
    assert bool(jnp.all(jnp.isfinite(out_bf16)))
    errbf = float(jnp.max(jnp.abs(out_bf16 - ref)))
    assert bool(jnp.allclose(out_bf16, ref, atol=5e-2, rtol=5e-2)), errbf

    print("KERNEL_OK")
</pallas_src>

<mosaic_0001>
module attributes {stable_mosaic.version = 11 : i64} {
  func.func @_cross_attention_kernel(%arg0: i32, %arg1: memref<1x8x64xf32, #tpu.memory_space<vmem>>, %arg2: memref<1x16x64xf32, #tpu.memory_space<vmem>>, %arg3: memref<64x64xf32, #tpu.memory_space<vmem>>, %arg4: memref<64x128xf32, #tpu.memory_space<vmem>>, %arg5: memref<64x64xf32, #tpu.memory_space<vmem>>, %arg6: memref<1x64xf32, #tpu.memory_space<vmem>>, %arg7: memref<1x8x64xf32, #tpu.memory_space<vmem>>) attributes {dimension_semantics = [#tpu.dimension_semantics<parallel>], iteration_bounds = array<i64: 2>, scalar_prefetch = 0 : i64, scratch_operands = 0 : i64, tpu.core_type = #tpu.core_type<tc>, window_params = [{transform_indices = @transform_0, window_bounds = array<i64: 1, 8, 64>}, {transform_indices = @transform_1, window_bounds = array<i64: 1, 16, 64>}, {pipeline_mode = #tpu.pipeline_mode<synchronous>, transform_indices = @transform_2, window_bounds = array<i64: 64, 64>}, {pipeline_mode = #tpu.pipeline_mode<synchronous>, transform_indices = @transform_3, window_bounds = array<i64: 64, 128>}, {pipeline_mode = #tpu.pipeline_mode<synchronous>, transform_indices = @transform_4, window_bounds = array<i64: 64, 64>}, {pipeline_mode = #tpu.pipeline_mode<synchronous>, transform_indices = @transform_5, window_bounds = array<i64: 1, 64>}, {transform_indices = @transform_6, window_bounds = array<i64: 1, 8, 64>}]} {
    %c0 = arith.constant 0 : index
    %c0_0 = arith.constant 0 : index
    %c0_1 = arith.constant 0 : index
    %0 = vector.load %arg1[%c0, %c0_0, %c0_1] : memref<1x8x64xf32, #tpu.memory_space<vmem>>, vector<1x8x64xf32>
    %1 = vector.shape_cast %0 : vector<1x8x64xf32> to vector<8x64xf32>
    %c0_2 = arith.constant 0 : index
    %c0_3 = arith.constant 0 : index
    %c0_4 = arith.constant 0 : index
    %2 = vector.load %arg2[%c0_2, %c0_3, %c0_4] : memref<1x16x64xf32, #tpu.memory_space<vmem>>, vector<1x16x64xf32>
    %3 = vector.shape_cast %2 : vector<1x16x64xf32> to vector<16x64xf32>
    %c0_5 = arith.constant 0 : index
    %c0_6 = arith.constant 0 : index
    %4 = vector.load %arg3[%c0_5, %c0_6] : memref<64x64xf32, #tpu.memory_space<vmem>>, vector<64x64xf32>
    %cst = arith.constant dense<0.000000e+00> : vector<8x64xf32>
    %5 = tpu.matmul %1, %4, %cst {dimension_numbers = #tpu.dot_dimension_numbers<[1], [0], [0], [1], [0, 0, 1, 1], [], []>} : vector<8x64xf32>, vector<64x64xf32>, vector<8x64xf32> -> vector<8x64xf32>
    %c0_7 = arith.constant 0 : index
    %c0_8 = arith.constant 0 : index
    %6 = vector.load %arg4[%c0_7, %c0_8] : memref<64x128xf32, #tpu.memory_space<vmem>>, vector<64x128xf32>
    %cst_9 = arith.constant dense<0.000000e+00> : vector<16x128xf32>
    %7 = tpu.matmul %3, %6, %cst_9 {dimension_numbers = #tpu.dot_dimension_numbers<[1], [0], [0], [1], [0, 0, 1, 1], [], []>} : vector<16x64xf32>, vector<64x128xf32>, vector<16x128xf32> -> vector<16x128xf32>
    %8 = vector.extract_strided_slice %7 {offsets = [0, 0], sizes = [16, 64], strides = [1, 1]} : vector<16x128xf32> to vector<16x64xf32>
    %9 = vector.extract_strided_slice %7 {offsets = [0, 64], sizes = [16, 64], strides = [1, 1]} : vector<16x128xf32> to vector<16x64xf32>
    %10 = vector.shape_cast %5 : vector<8x64xf32> to vector<1x8x8x8xf32>
    %11 = tpu.transpose %10, [0, 2, 1, 3] : vector<1x8x8x8xf32> -> vector<1x8x8x8xf32>
    %12 = vector.shape_cast %11 : vector<1x8x8x8xf32> to vector<8x8x8xf32>
    %13 = vector.shape_cast %8 : vector<16x64xf32> to vector<1x16x8x8xf32>
    %14 = tpu.transpose %13, [0, 2, 1, 3] : vector<1x16x8x8xf32> -> vector<1x8x16x8xf32>
    %15 = vector.shape_cast %14 : vector<1x8x16x8xf32> to vector<8x16x8xf32>
    %16 = vector.shape_cast %9 : vector<16x64xf32> to vector<1x16x8x8xf32>
    %17 = tpu.transpose %16, [0, 2, 1, 3] : vector<1x16x8x8xf32> -> vector<1x8x16x8xf32>
    %18 = vector.shape_cast %17 : vector<1x8x16x8xf32> to vector<8x16x8xf32>
    "tpu.trace_start"() <{level = 10 : i32, message = "bnd,bmd->bnm"}> : () -> ()
    %cst_10 = arith.constant dense<0.000000e+00> : vector<8x8x16xf32>
    %19 = tpu.matmul %12, %15, %cst_10 {dimension_numbers = #tpu.dot_dimension_numbers<[2], [2], [1], [1], [0, 0, 0, 1, 1, 1], [0], [0]>} : vector<8x8x8xf32>, vector<8x16x8xf32>, vector<8x8x16xf32> -> vector<8x8x16xf32>
    "tpu.trace_stop"() : () -> ()
    %20 = vector.shape_cast %19 : vector<8x8x16xf32> to vector<64x16xf32>
    %cst_11 = arith.constant dense<0xFF800000> : vector<64xf32>
    %21 = vector.multi_reduction <maximumf>, %20, %cst_11 [1] : vector<64x16xf32> to vector<64xf32>
    %22 = vector.shape_cast %21 : vector<64xf32> to vector<64x1xf32>
    %23 = vector.broadcast %22 : vector<64x1xf32> to vector<64x16xf32>
    %24 = arith.subf %20, %23 : vector<64x16xf32>
    %25 = math.exp %24 : vector<64x16xf32>
    %cst_12 = arith.constant dense<0.000000e+00> : vector<64xf32>
    %26 = vector.multi_reduction <add>, %25, %cst_12 [1] : vector<64x16xf32> to vector<64xf32>
    %27 = vector.shape_cast %26 : vector<64xf32> to vector<64x1xf32>
    %28 = tpu.reciprocal %27 {approx = true} : vector<64x1xf32> -> vector<64x1xf32>
    %29 = vector.broadcast %28 : vector<64x1xf32> to vector<64x16xf32>
    %30 = arith.mulf %25, %29 : vector<64x16xf32>
    %31 = vector.shape_cast %30 : vector<64x16xf32> to vector<8x8x16xf32>
    "tpu.trace_start"() <{level = 10 : i32, message = "bnm,bmd->bnd"}> : () -> ()
    %cst_13 = arith.constant dense<0.000000e+00> : vector<8x8x8xf32>
    %32 = tpu.matmul %31, %18, %cst_13 {dimension_numbers = #tpu.dot_dimension_numbers<[2], [1], [1], [2], [0, 0, 0, 1, 1, 2], [0], [0]>} : vector<8x8x16xf32>, vector<8x16x8xf32>, vector<8x8x8xf32> -> vector<8x8x8xf32>
    "tpu.trace_stop"() : () -> ()
    %33 = vector.shape_cast %32 : vector<8x8x8xf32> to vector<1x8x8x8xf32>
    %34 = tpu.transpose %33, [0, 2, 1, 3] : vector<1x8x8x8xf32> -> vector<1x8x8x8xf32>
    %35 = vector.shape_cast %34 : vector<1x8x8x8xf32> to vector<8x64xf32>
    %c0_14 = arith.constant 0 : index
    %c0_15 = arith.constant 0 : index
    %36 = vector.load %arg5[%c0_14, %c0_15] : memref<64x64xf32, #tpu.memory_space<vmem>>, vector<64x64xf32>
    %cst_16 = arith.constant dense<0.000000e+00> : vector<8x64xf32>
    %37 = tpu.matmul %35, %36, %cst_16 {dimension_numbers = #tpu.dot_dimension_numbers<[1], [0], [0], [1], [0, 0, 1, 1], [], []>} : vector<8x64xf32>, vector<64x64xf32>, vector<8x64xf32> -> vector<8x64xf32>
    %c0_17 = arith.constant 0 : index
    %c0_18 = arith.constant 0 : index
    %38 = vector.load %arg6[%c0_17, %c0_18] : memref<1x64xf32, #tpu.memory_space<vmem>>, vector<1x64xf32>
    %39 = vector.broadcast %38 : vector<1x64xf32> to vector<8x64xf32>
    %40 = arith.addf %37, %39 : vector<8x64xf32>
    %41 = vector.shape_cast %40 : vector<8x64xf32> to vector<1x8x64xf32>
    %c0_19 = arith.constant 0 : index
    %c0_20 = arith.constant 0 : index
    %c0_21 = arith.constant 0 : index
    %42 = vector.load %arg7[%c0_19, %c0_20, %c0_21] : memref<1x8x64xf32, #tpu.memory_space<vmem>>, vector<1x8x64xf32>
    tpu.vector_store %arg7[%c0_19, %c0_20, %c0_21], %41 {strides = array<i32>} : memref<1x8x64xf32, #tpu.memory_space<vmem>>, vector<1x8x64xf32>,
    return
  }
  func.func @transform_0(%arg0: i32) -> (i32, i32, i32) {
    %c0_i32 = arith.constant 0 : i32
    %c0_i32_0 = arith.constant 0 : i32
    %c0_i32_1 = arith.constant 0 : i32
    return %arg0, %c0_i32, %c0_i32_0 : i32, i32, i32
  }
  func.func @transform_1(%arg0: i32) -> (i32, i32, i32) {
    %c0_i32 = arith.constant 0 : i32
    %c0_i32_0 = arith.constant 0 : i32
    %c0_i32_1 = arith.constant 0 : i32
    return %arg0, %c0_i32, %c0_i32_0 : i32, i32, i32
  }
  func.func @transform_2(%arg0: i32) -> (i32, i32) {
    %c0_i32 = arith.constant 0 : i32
    %c0_i32_0 = arith.constant 0 : i32
    %c0_i32_1 = arith.constant 0 : i32
    return %c0_i32, %c0_i32_0 : i32, i32
  }
  func.func @transform_3(%arg0: i32) -> (i32, i32) {
    %c0_i32 = arith.constant 0 : i32
    %c0_i32_0 = arith.constant 0 : i32
    %c0_i32_1 = arith.constant 0 : i32
    return %c0_i32, %c0_i32_0 : i32, i32
  }
  func.func @transform_4(%arg0: i32) -> (i32, i32) {
    %c0_i32 = arith.constant 0 : i32
    %c0_i32_0 = arith.constant 0 : i32
    %c0_i32_1 = arith.constant 0 : i32
    return %c0_i32, %c0_i32_0 : i32, i32
  }
  func.func @transform_5(%arg0: i32) -> (i32, i32) {
    %c0_i32 = arith.constant 0 : i32
    %c0_i32_0 = arith.constant 0 : i32
    %c0_i32_1 = arith.constant 0 : i32
    return %c0_i32, %c0_i32_0 : i32, i32
  }
  func.func @transform_6(%arg0: i32) -> (i32, i32, i32) {
    %c0_i32 = arith.constant 0 : i32
    %c0_i32_0 = arith.constant 0 : i32
    %c0_i32_1 = arith.constant 0 : i32
    return %arg0, %c0_i32, %c0_i32_0 : i32, i32, i32
  }
}

</mosaic_0001>

<bundles_post_ra>
// kernel: tpu_custom_call.1
= control target key start
LH: loop header
LB: loop body
LE: loop exit
PB: predicated region body
PF: predicated region fallthrough
CT: control target
= control target key end

     0   :  { %s4324_s0 = inlined_call_operand.hbm [shape: f32[2,8,64], index: 0, kind: input, shape index: {}]   ;;  %s4325_s1 = inlined_call_operand.hbm [shape: f32[2,16,64], index: 1, kind: input, shape index: {}]   ;;  %s4326_s2 = inlined_call_operand.hbm [shape: f32[64,64], index: 2, kind: input, shape index: {}]   ;;  %s4327_s3 = inlined_call_operand.hbm [shape: f32[64,128], index: 3, kind: input, shape index: {}]   ;;  %s4328_s4 = inlined_call_operand.hbm [shape: f32[64,64], index: 4, kind: input, shape index: {}]   ;;  %s4329_s5 = inlined_call_operand.vmem [shape: f32[1,64], index: 5, kind: input, shape index: {}]   ;;  %s4330_s6 = inlined_call_operand.hbm [shape: f32[2,8,64], index: 6, kind: output, shape index: {}]  }
   0x1   :  { %4333 = sst [smem:[#allocation18_spill]] %s4326_s2 }
   0x2   :  { %4334 = sst [smem:[#allocation19_spill]] %s4327_s3 }
   0x3   :  { %4335 = sst [smem:[#allocation20_spill]] %s4328_s4 }
   0x4   :  { %11 = vsyncpa [#allocation3], 0 }
   0x5   :  { %13 = vsyncpa [#allocation3 + $0x1], 0 }
   0x6   :  { %14 = vsyncpa [#allocation6], 0 }
   0x7   :  { %16 = vsyncpa [#allocation6 + $0x1], 0 }
   0x8   :  { %17 = vsyncpa [#allocation9], 0 }
   0x9   :  { %18 = vsyncpa [#allocation4], 0 }
   0xa   :  { %20 = vsyncpa [#allocation4 + $0x1], 0  ;;  %s3130_s21 = smov 0   ;;  %s3132_s22 = smov 0  }
   0xb   :  { %s3134_s23 = smov 0   ;;  %s3136_s24 = smov 0  }
   0xc LB: > { %s4336_s2 = sld [smem:[#allocation18_spill]]  ;;  %s3154_s28 = sadd.s32 4294967295, %s3071_s24   ;;  %s3071_s24 = sphi %s3136_s24, %s4354_s24   ;;  %s3067_s23 = sphi %s3134_s23, %s4353_s23   ;;  %s3063_s22 = sphi %s3132_s22, %s4352_s22   ;;  %s3059_s21 = sphi %s3130_s21, %s4351_s21  }
   0xd   : > { %p2611_p0 = scmp.ge.s32.totalorder %s3071_s24, 1  ;;  %p47_p1 = scmp.eq.s32.totalorder %s3154_s28, 0 }
   0xe   : > { %p193_p2 = scmp.lt.s32.totalorder %s3071_s24, 3  ;;  %s3073_s30 = smov [#allocation7]  }
   0xf   : > { %s206_s7 = sshll.u32 %s3073_s30, 4  ;;  %s4338_s3 = sld [smem:[#allocation19_spill]]  ;;  %s207_s7 = int_to_ptr.vmem [resolvable:$true] %s206_s7 }
  0x10   : > { %p3159_p3 = pnand %p2611_p0, %p193_p2  ;;  %s4340_s4 = sld [smem:[#allocation20_spill]] }
  0x11   : > { %s3074_s15 = smov [#allocation8]   ;;  %s4331_s17 = smov 128  }
  0x12   : > { %s204_s27 = sshll.u32 %s4336_s2, 4  ;;  %p2687_p4 = pneg %p3159_p3  ;;  %s205_s27 = int_to_ptr.hbm [resolvable:$true] %s204_s27 }
  0x13   : > { %s220_s16 = sshll.u32 %s3074_s15, 4  ;;  %s4332_s18 = smov 8   ;;  %s221_s16 = int_to_ptr.vmem [resolvable:$true] %s220_s16 }
  0x14   : > { %p3171_p6 = pnand %p2687_p4, %p47_p1  ;;  %s3077_s19 = smov [#allocation10]  }
  0x15   : > { %s218_s10 = sshll.u32 %s4338_s3, 4  ;;  %s234_s20 = sshll.u32 %s3077_s19, 4  ;;  %s219_s10 = int_to_ptr.hbm [resolvable:$true] %s218_s10  ;;  %s235_s20 = int_to_ptr.vmem [resolvable:$true] %s234_s20 }
  0x16   : > { %s232_s14 = sshll.u32 %s4340_s4, 4  ;;  %s2610_s25 = sadd.s32 4294967294, %s3071_s24   ;;  %s233_s14 = int_to_ptr.hbm [resolvable:$true] %s232_s14 }
  0x17   : > { %2690 = dma.hbm_to_vmem [thread:$0]  (!%p3171_p6), %s205_s27, 1024, %s207_s7, [#allocation6], %s4331_s17, %s4331_s17, %s4332_s18  }
  0x18   : > { %2693 = dma.hbm_to_vmem [thread:$0]  (!%p3171_p6), %s219_s10, 1024, %s221_s16, [#allocation9], %s4331_s17, %s4331_s17, %s4332_s18  }
  0x19   : > { %2696 = dma.hbm_to_vmem [thread:$0]  (!%p3171_p6), %s233_s14, 1024, %s235_s20, [#allocation9], %s4331_s17, %s4331_s17, %s4332_s18  }
  0x1a   : > { %s3195_s26 = sadd.s32 1, %s3071_s24   ;;  %s33_s27 = sadd.s32 1, %s3067_s23 }
  0x1b   : > { %s30_s30 = ssub.s32 %s3071_s24, %s3195_s26  ;;  %p40_p7 = scmp.ne.s32.totalorder %s3067_s23, %s3063_s22 }
  0x1c   : > { %p31_p8 = scmp.eq.s32.totalorder %s30_s30, 0  ;;  %p41_p9 = scmp.eq.s32.totalorder %s3071_s24, 0 }
  0x1d   : > { %p46_p10 = scmp.ne.s32.totalorder %s3063_s22, %s3059_s21  ;;  %p180_p11 = scmp.eq.s32.totalorder %s3154_s28, 1 }
  0x1e   : > { %s3207_s7 = scalar_select %p31_p8, %s3067_s23, %s33_s27  }
  0x1f   : > { %p3209_p12 = por %p41_p9, %p40_p7  ;;  %p3215_p13 = por %p47_p1, %p46_p10 }
  0x20   : > { %4341 = sst [smem:[#allocation17_spill]] %s3207_s7  ;;  %p3219_p0 = por %p180_p11, %p40_p7 }
  0x21   : > { %p186_p2 = scmp.eq.s32.totalorder %s2610_s25, 1  ;;  %p2711_p4 = scmp.lt.s32.totalorder %s3071_s24, 2 }
  0x22   : > { %s3225_s11 = sand.u32 1, %s3067_s23   ;;  %s2617_s14 = sshll.u32 %s3071_s24, 3 }
  0x23   : > { %p3227_p6 = por %p186_p2, %p46_p10  ;;  %s2616_s13 = sshll.u32 %s3225_s11, 3 }
  0x24   : > { %s259_s19 = scalar_lea.hbm %s4324_s0, %s2617_s14  ;;  %s255_s27 = scalar_lea.vmem [#allocation2], %s2616_s13 }
  0x25   : > { %s261_s20 = sshll.u32 %s259_s19, 4  ;;  %s263_s30 = sshll.u32 %s255_s27, 4  ;;  %s262_s20 = int_to_ptr.hbm [resolvable:$true] %s261_s20  ;;  %s264_s30 = int_to_ptr.vmem [resolvable:$true] %s263_s30 }
  0x26   : > { %p3238_p7 = pnand %p2711_p4, %p3209_p12  ;;  %s2618_s17 = sshll.u32 %s3225_s11, 4 }
  0x27   : > { %s270_s18 = sand.u32 1, %s3071_s24   ;;  %s274_s2 = scalar_lea.vmem [#allocation5], %s2618_s17 }
  0x28   : > { %s282_s3 = sshll.u32 %s274_s2, 4  ;;  %s252_s4 = scalar_lea.sflag [#allocation3], %s3225_s11  ;;  %s283_s3 = int_to_ptr.vmem [resolvable:$true] %s282_s3 }
  0x29   : > { %s2933_s7 = sshra.s32 %s262_s20, 4  ;;  %p2937_p9 = pneg %p3238_p7  ;;  %s2934_s7 = int_to_ptr.hbm [resolvable:$true] %s2933_s7 }
  0x2a   : > { %s2935_s14 = scalar_lea.hbm %s2934_s7, 8  ;;  %s2940_s15 = scalar_lea.hbm %s4324_s0, 16 }
  0x2b   : > { %p2936_p8 = scmp.ne.s32.totalorder %s2934_s7, %s2935_s14  ;;  %p2941_p12 = scmp.lt.s32.totalorder %s2934_s7, %s4324_s0 }
  0x2c   : > { %p2942_p2 = scmp.lt.s32.totalorder %s2940_s15, %s2935_s14 }
  0x2d   : > { %p2938_p10 = pnand %p2937_p9, %p2936_p8 }
  0x2e   : > { %p2943_p4 = por %p2942_p2, %p2941_p12 }
  0x2f   : > { %p2939_p11 = pneg %p2938_p10 }
  0x31   : > { %p2944_p5 = pnand %p2943_p4, %p2939_p11 }
  0x33   : > { %2947 = shalt.err (!%p2944_p5)
}
  0x34   : > { %2700 = dma.hbm_to_vmem [thread:$0]  (!%p3238_p7), %s262_s20, 128, %s264_s30, %s252_s4  }
  0x35   : > { %s2668_s2 = sshll.u32 %s3071_s24, 4  ;;  %s271_s13 = scalar_lea.sflag [#allocation6], %s270_s18 }
  0x36   : > { %s279_s27 = scalar_lea.hbm %s4325_s1, %s2668_s2  ;;  %s2970_s4 = scalar_lea.hbm %s4325_s1, 32 }
  0x37   : > { %s280_s8 = sshll.u32 %s279_s27, 4  ;;  %s281_s8 = int_to_ptr.hbm [resolvable:$true] %s280_s8 }
  0x38   : > { %s2963_s16 = sshra.s32 %s281_s8, 4  ;;  %s2964_s16 = int_to_ptr.hbm [resolvable:$true] %s2963_s16 }
  0x39   : > { %s2965_s7 = scalar_lea.hbm %s2964_s16, 16  ;;  %p2971_p11 = scmp.lt.s32.totalorder %s2964_s16, %s4325_s1 }
  0x3a   : > { %p2966_p8 = scmp.ne.s32.totalorder %s2964_s16, %s2965_s7  ;;  %p2972_p12 = scmp.lt.s32.totalorder %s2970_s4, %s2965_s7 }
  0x3c   : > { %p2968_p5 = pnand %p2966_p8, %p2937_p9  ;;  %p2973_p2 = por %p2972_p12, %p2971_p11 }
  0x3e   : > { %p2969_p10 = pneg %p2968_p5 }
  0x40   : > { %p2974_p4 = pnand %p2973_p2, %p2969_p10 }
  0x42   : > { %2977 = shalt.err (!%p2974_p4)
}
  0x43   : > { %s4347_s18 = smov 8   ;;  %s4348_s19 = smov 128  }
  0x44   : > { %2703 = dma.hbm_to_vmem [thread:$0]  (!%p3238_p7), %s281_s8, 256, %s283_s3, %s271_s13, %s4348_s19, %s4348_s19, %s4347_s18  }
  0x45   : > { %294 = sbr.rel (%p3159_p3) target bundleno = 1253 (0x4e5), region = 44  ;;  %s3279_s2 = sand.u32 (!%p3159_p3), 1, %s3063_s22  }
  0x46   : > { %s2622_s17 = sshll.u32 (!%p3159_p3), %s3279_s2, 3  ;;  %s297_s11 = scalar_lea.sflag (!%p3159_p3), [#allocation3], %s3279_s2 }
  0x47   : > { %s3285_s27 = scalar_lea.vmem (!%p3159_p3), [#allocation2], %s2622_s17 }
  0x4a   : > { %3038 = dma.done.wait (%p3215_p13), %s297_s11, 128  }
  0x4b   : > { %3040 = vsyncadd (%p3215_p13), %s297_s11, 4294967168  ;;  %s306_s3 = sand.u32 1, %s3154_s28   ;;  %s2623_s29 = sshll.u32 %s3279_s2, 4 }
  0x4c   : > { %s307_s25 = scalar_lea.sflag [#allocation6], %s306_s3  ;;  %s3293_s8 = scalar_lea.vmem [#allocation5], %s2623_s29 }
  0x4d   : > { %3042 = dma.done.wait (%p3215_p13), %s307_s25, 256  }
  0x4e   : > { %3044 = vsyncadd (%p3215_p13), %s307_s25, 4294967040 }
  0x4f   : > { %3046 = dma.done.wait (%p47_p1), [#allocation6], 1024  }
  0x50   : > { %3048 = vsyncadd (%p47_p1), [#allocation6], 4294966272 }
  0x51   : > { %3050 = dma.done.wait (%p47_p1), [#allocation9], 2048  }
  0x52   : > { %3052 = vsyncadd (%p47_p1), [#allocation9], 4294965248  ;;  %v402_v0 = vld [vmem:[#allocation8 + $0x38] sm:$0xff]  ;;  %v401_v1 = vld [vmem:[#allocation8 + $0x30] sm:$0xff]  ;;  %vm371_vm0 = vcmask 523264   ;;  %s3078_s9 = smov 96  }
  0x53   : > { %417 = vmatpush.msra.mxu1 %v402_v0  ;;  %v370_v2 = vld [vmem:[#allocation7 + $0x38] sm:$0xff]  ;;  %v400_v3 = vld [vmem:[#allocation8 + $0x28] sm:$0xff]  ;;  %v369_v4 = vld [vmem:[#allocation7 + $0x30] sm:$0xff]  ;;  %s3079_s13 = smov 104   ;;  %s3080_s16 = smov 112   ;;  %vm455_vm1 = vcmask 1047556  }
  0x54   : > { %383 = vmatpush.msra.mxu0 %v370_v2  ;;  %v368_v5 = vld [vmem:[#allocation7 + $0x28] sm:$0xff]  ;;  %v399_v6 = vld [vmem:[#allocation8 + $0x20] sm:$0xff]  ;;  %v398_v8 = vld [vmem:[#allocation8 + $0x18] sm:$0xff]  ;;  %s3081_s7 = smov 88   ;;  %s3082_s14 = smov 120   ;;  %vm1667_vm2 = vcmask 64512  }
  0x55   : > { %418 = vmatpush.msra.mxu1 %v401_v1  ;;  %v367_v7 = vld [vmem:[#allocation7 + $0x20] sm:$0xff]  ;;  %v366_v9 = vld [vmem:[#allocation7 + $0x18] sm:$0xff]  ;;  %v397_v10 = vld [vmem:[#allocation8 + $0x10] sm:$0xff]  ;;  %s3083_s15 = smov 80   ;;  %s3084_s4 = smov 72   ;;  %vm1900_vm3 = vcmask 130048  }
  0x56   : > { %384 = vmatpush.msra.mxu0 %v369_v4  ;;  %v365_v11 = vld [vmem:[#allocation7 + $0x10] sm:$0xff]  ;;  %v396_v12 = vld [vmem:[#allocation8 + $0x8] sm:$0xff]  ;;  %v395_v14 = vld [vmem:[#allocation8] sm:$0xff]  ;;  %s3085_s20 = smov 64   ;;  %v3086_v27 = vmov 1983009808  }
  0x57   : > { %419 = vmatpush.msra.mxu1 %v400_v3  ;;  %v364_v13 = vld [vmem:[#allocation7 + $0x8] sm:$0xff]  ;;  %v361_v15 = vld [vmem:[%s3293_s8] sm:$0xff]  ;;  %v360_v17 = vld [vmem:[%s3285_s27] sm:$0xff]  ;;  %v460_v28 = vunpack.c.l.s4 %v3086_v27  ;;  %v3087_v47 = vmov 1934713408   ;;  %s3088_s30 = smov 32  }
  0x58   : > { %385 = vmatpush.msra.mxu0 %v368_v5  ;;  %v363_v16 = vld [vmem:[#allocation7] sm:$0xff]  ;;  %v362_v18 = vld [vmem:[%s3293_s8 + $0x8] sm:$0xff]  ;;  %v508_v48 = vunpack.c.l.s4 %v3087_v47  ;;  %s3089_s18 = smov 24   ;;  %s3090_s19 = smov 16   ;;  %vm2427_vm4 = vcmask 195584   ;;  %vm2429_vm5 = vcmask 261120  }
  0x59   : > { %420 = vmatpush.msra.mxu1 %v399_v6  ;;  %v3341_v31 = vunpack.c.0.s8 %v460_v28  ;;  %s3091_s11 = smov 8   ;;  %s3092_s27 = smov 56   ;;  %vm2431_vm6 = vcmask 326656   ;;  %vm2433_vm7 = vcmask 392192   ;;  %vm2435_vm8 = vcmask 457728  }
  0x5a   : > { %386 = vmatpush.msra.mxu0 %v367_v7  ;;  %v3370_v57 = vunpack.c.0.s8 %v508_v48  ;;  %s3093_s3 = smov 40   ;;  %s3094_s29 = smov 48  }
  0x5b   : > { %421 = vmatpush.msra.mxu1 %v398_v8  ;;  %s2665_s25 = sshll.u32 %s3154_s28, 3  ;;  %s2474_s28 = scalar_lea.sflag [#allocation4], %s3279_s2 }
  0x5c   : > { %387 = vmatpush.msra.mxu0 %v366_v9 }
  0x5d   : > { %422 = vmatpush.msra.mxu1 %v397_v10 }
  0x5e   : > { %388 = vmatpush.msra.mxu0 %v365_v11 }
  0x5f   : > { %423 = vmatpush.msra.mxu1 %v396_v12 }
  0x60   : > { %389 = vmatpush.msra.mxu0 %v364_v13 }
  0x61   : > { %424 = vmatpush.msra.mxu1 %v395_v14 }
  0x62   : > { %2629 = vmatmul.msk.f32.vlgmr.msra.gmra.mxu1 %vm371_vm0, %v361_v15  ;;  %390 = vmatpush.msra.mxu0 %v363_v16 }
  0x63   : > { %2628 = vmatmul.msk.f32.vlgmr.msra.gmra.mxu0 %vm371_vm0, %v360_v17 }
  0x6a   : > { %2630 = vmatmul.msk.f32.gmra.mxu1 %vm371_vm0, %v362_v18 }
  0xdf   : > { %v426_v19 = vpop.f32.mrf.mxu1 }
  0xe0   : > { %699 = vrot.lane.b32.xlu1 %v426_v19, %s3078_s9  ;;  %693 = vrot.lane.b32.xlu0 %v426_v19, %s3079_s13  ;;  %v3313_v20 = vpop.f32.mrf.mxu0  ;;  %v725_v30 = vrot.slane %v426_v19, 4 }
  0xe1   : > { %687 = vrot.lane.b32.xlu2 %v426_v19, %s3080_s16  ;;  %v457_v61 = vrot.slane %v3313_v20, 4 }
  0xe7   : > { %v3318_v21 = vpop.f32.mrf.mxu1 }
  0xe8   : > { %705 = vrot.lane.b32.xlu1 %v426_v19, %s3081_s7  ;;  %436 = vrot.lane.b32.xlu0 %v3313_v20, %s3080_s16  ;;  %v2770_v22 = vpack.i.bf16 %v426_v19, %v3318_v21 }
  0xe9   : > { %681 = vrot.lane.b32.xlu2 %v426_v19, %s3082_s14 }
  0xf0   : > { %439 = vrot.lane.b32.xlu1 %v3313_v20, %s3079_s13  ;;  %433 = vrot.lane.b32.xlu0 %v3313_v20, %s3082_s14 }
  0xf1   : > { %711 = vrot.lane.b32.xlu2 %v426_v19, %s3083_s15 }
  0xf8   : > { %695 = vrot.lane.b32.xlu1 %v3318_v21, %s3079_s13  ;;  %689 = vrot.lane.b32.xlu0 %v3318_v21, %s3080_s16  ;;  %s2484_s13 = scalar_lea.hbm %s4330_s6, %s2665_s25 }
  0xf9   : > { %717 = vrot.lane.b32.xlu2 %v426_v19, %s3084_s4 }
 0x100   : > { %701 = vrot.lane.b32.xlu1 %v3318_v21, %s3078_s9  ;;  %683 = vrot.lane.b32.xlu0 %v3318_v21, %s3082_s14  ;;  %s359_s14 = scalar_lea.vmem [#allocation11], %s2622_s17  ;;  %s3013_s17 = scalar_lea.hbm %s4330_s6, 16 }
 0x101   : > { %713 = vrot.lane.b32.xlu2 %v3318_v21, %s3083_s15 }
 0x108   : > { %719 = vrot.lane.b32.xlu1 %v3318_v21, %s3084_s4  ;;  %707 = vrot.lane.b32.xlu0 %v3318_v21, %s3081_s7 }
 0x109   : > { %442 = vrot.lane.b32.xlu2 %v3313_v20, %s3078_s9 }
 0x110   : > { %445 = vrot.lane.b32.xlu1 %v3313_v20, %s3081_s7  ;;  %448 = vrot.lane.b32.xlu0 %v3313_v20, %s3083_s15  ;;  %s2486_s15 = sshll.u32 %s359_s14, 4  ;;  %s2487_s15 = int_to_ptr.vmem [resolvable:$true] %s2486_s15 }
 0x111   : > { %451 = vrot.lane.b32.xlu2 %v3313_v20, %s3084_s4  ;;  %s2488_s4 = sshll.u32 %s2484_s13, 4  ;;  %s2489_s4 = int_to_ptr.hbm [resolvable:$true] %s2488_s4 }
 0x118   : > { %2771 = vrot.lane.b32.xlu1 %v2770_v22, %s3085_s20 }
 0x13b   : > { %v3333_v23 = vpop.permute.xlu2 %687 }
 0x13c   : > { %v723_v26 = vrot.slane %v3333_v23, 4  ;;  %v726_v33 = vsel %vm455_vm1, %v3333_v23, %v725_v30 }
 0x13d   : > { %v734_v44 = vperm.slane %v726_v33, %v3341_v31 }
 0x13e   : > { %v724_v29 = vsel %vm455_vm1, %v723_v26, %v426_v19 }
 0x13f   : > { %v730_v37 = vperm.slane %v724_v29, %v3341_v31  ;;  %v785_v54 = vrot.slane %v734_v44, 4 }
 0x141   : > { %v773_v50 = vrot.slane %v730_v37, 4 }
 0x143   : > { %v3335_v24 = vpop.permute.xlu2 %681 }
 0x144   : > { %v737_v32 = vrot.slane %v3335_v24, 4 }
 0x14b   : > { %v3337_v25 = vpop.permute.xlu2 %711 }
 0x14c   : > { %v747_v34 = vrot.slane %v3337_v25, 4 }
 0x152   : > { %v3347_v35 = vpop.permute.xlu1 %699  ;;  %v3349_v36 = vpop.permute.xlu0 %693 }
 0x153   : > { %v749_v38 = vrot.slane %v3347_v35, 4  ;;  %v735_v39 = vrot.slane %v3349_v36, 4  ;;  %v738_v40 = vsel %vm455_vm1, %v3349_v36, %v737_v32  ;;  %v3356_v41 = vpop.permute.xlu2 %717  ;;  %v748_v42 = vsel %vm455_vm1, %v747_v34, %v3347_v35 }
 0x154   : > { %v746_v43 = vperm.slane %v738_v40, %v3341_v31  ;;  %v754_v51 = vperm.slane %v748_v42, %v3341_v31  ;;  %v759_v58 = vrot.slane %v3356_v41, 4 }
 0x155   : > { %v736_v45 = vsel %vm455_vm1, %v735_v39, %v3335_v24  ;;  %v750_v46 = vsel %vm455_vm1, %v3337_v25, %v749_v38 }
 0x156   : > { %v742_v49 = vperm.slane %v736_v45, %v3341_v31  ;;  %v783_v52 = vrot.slane %v746_v43, 4  ;;  %v758_v55 = vperm.slane %v750_v46, %v3341_v31  ;;  %v797_v62 = vrot.slane %v754_v51, 4 }
 0x157   : > { %v786_v1 = vsel %vm455_vm1, %v746_v43, %v785_v54  ;;  %v837_v45 = vrot.slane %v3318_v21, 4 }
 0x158   : > { %v771_v53 = vrot.slane %v742_v49, 4  ;;  %v774_v56 = vsel %vm455_vm1, %v742_v49, %v773_v50  ;;  %v784_v0 = vsel %vm455_vm1, %v783_v52, %v734_v44  ;;  %v809_v7 = vrot.slane %v758_v55, 4 }
 0x159   : > { %v782_v3 = vperm.slane %v774_v56, %v3370_v57  ;;  %v790_v12 = vperm.slane %v784_v0, %v3370_v57  ;;  %v794_v19 = vperm.slane %v786_v1, %v3370_v57 }
 0x15a   : > { %v3373_v59 = vpop.permute.xlu1 %705  ;;  %v437_v60 = vpop.permute.xlu0 %436  ;;  %v772_v63 = vsel %vm455_vm1, %v771_v53, %v730_v37 }
 0x15b   : > { %v3379_v2 = vpop.permute.xlu2 %713  ;;  %v761_v4 = vrot.slane %v3373_v59, 4  ;;  %v2800_v5 = vpack.i.bf16 %v3337_v25, %v3373_v59  ;;  %v760_v6 = vsel %vm455_vm1, %v759_v58, %v3373_v59  ;;  %v454_v10 = vrot.slane %v437_v60, 4 }
 0x15c   : > { %v766_v8 = vperm.slane %v760_v6, %v3341_v31  ;;  %v2795_v9 = vpack.i.bf16 %v3349_v36, %v3379_v2  ;;  %v778_v11 = vperm.slane %v772_v63, %v3370_v57  ;;  %v458_v14 = vsel %vm455_vm1, %v437_v60, %v457_v61 }
 0x15d   : > { %v762_v13 = vsel %vm455_vm1, %v3356_v41, %v761_v4  ;;  %v456_v18 = vsel %vm455_vm1, %v454_v10, %v3313_v20  ;;  %v825_v22 = vrot.slane %v782_v3, 4  ;;  %v466_v32 = vperm.slane %v458_v14, %v3341_v31 }
 0x15e   : > { %v770_v15 = vperm.slane %v762_v13, %v3341_v31  ;;  %v795_v16 = vrot.slane %v766_v8, 4  ;;  %v798_v17 = vsel %vm455_vm1, %v766_v8, %v797_v62  ;;  %v462_v27 = vperm.slane %v456_v18, %v3341_v31 }
 0x15f   : > { %v806_v26 = vperm.slane %v798_v17, %v3370_v57  ;;  %v821_v40 = vrot.slane %v778_v11, 4  ;;  %v829_v42 = vrot.slane %v790_v12, 4  ;;  %v833_v46 = vrot.slane %v794_v19, 4 }
 0x160   : > { %v796_v28 = vsel %vm455_vm1, %v795_v16, %v754_v51  ;;  %v807_v29 = vrot.slane %v770_v15, 4  ;;  %v810_v30 = vsel %vm455_vm1, %v770_v15, %v809_v7  ;;  %v859_v53 = vrot.slane %v3379_v2, 4 }
 0x161   : > { %v802_v33 = vperm.slane %v796_v28, %v3370_v57  ;;  %v818_v34 = vperm.slane %v810_v30, %v3370_v57  ;;  %v823_v37 = vrot.slane %v806_v26, 4  ;;  %v3408_v20 = vsel %vm455_vm1, %v806_v26, %v825_v22 }
 0x162   : > { %v440_v38 = vpop.permute.xlu1 %439  ;;  %v434_v39 = vpop.permute.xlu0 %433  ;;  %v808_v43 = vsel %vm455_vm1, %v807_v29, %v758_v55  ;;  %v959_v52 = vrot.slane %v3408_v20, 4  ;;  %v505_v54 = vrot.slane %v462_v27, 4  ;;  %v517_v55 = vrot.slane %v466_v32, 4 }
 0x163   : > { %v3411_v44 = vpop.permute.xlu2 %442  ;;  %v814_v47 = vperm.slane %v808_v43, %v3370_v57  ;;  %v819_v48 = vrot.slane %v802_v33, 4  ;;  %v3416_v49 = vsel %vm455_vm1, %v823_v37, %v782_v3  ;;  %v3419_v50 = vsel %vm455_vm1, %v802_v33, %v821_v40 }
 0x164   : > { %v831_v51 = vrot.slane %v818_v34, 4  ;;  %v467_v56 = vrot.slane %v440_v38, 4  ;;  %v469_v58 = vrot.slane %v434_v39, 4  ;;  %v3424_v60 = vsel %vm455_vm1, %v818_v34, %v833_v46 }
 0x165   : > { %v3427_v61 = vsel %vm455_vm1, %v819_v48, %v778_v11  ;;  %v947_v63 = vrot.slane %v3416_v49, 4  ;;  %v827_v0 = vrot.slane %v814_v47, 4  ;;  %v961_v1 = vrot.slane %v3419_v50, 4 }
 0x166   : > { %v3430_v62 = vsel %vm455_vm1, %v831_v51, %v794_v19  ;;  %v468_v3 = vsel %vm455_vm1, %v467_v56, %v434_v39  ;;  %v470_v4 = vsel %vm455_vm1, %v440_v38, %v469_v58  ;;  %v481_v6 = vrot.slane %v3411_v44, 4 }
 0x167   : > { %v474_v7 = vperm.slane %v468_v3, %v3341_v31  ;;  %v478_v8 = vperm.slane %v470_v4, %v3341_v31  ;;  %v960_v10 = vsel %vm455_vm1, %v959_v52, %v3419_v50  ;;  %v983_v11 = vrot.slane %v3424_v60, 4 }
 0x168   : > { %v3443_v15 = vsel %vm455_vm1, %v814_v47, %v829_v42  ;;  %v948_v16 = vsel %vm455_vm1, %v947_v63, %v3427_v61  ;;  %v971_v17 = vrot.slane %v3430_v62, 4  ;;  %v3454_v29 = vsel %vm455_vm1, %v827_v0, %v790_v12 }
 0x169   : > { %v503_v18 = vrot.slane %v474_v7, 4  ;;  %v506_v19 = vsel %vm455_vm1, %v474_v7, %v505_v54  ;;  %v515_v22 = vrot.slane %v478_v8, 4  ;;  %v518_v26 = vsel %vm455_vm1, %v478_v8, %v517_v55 }
 0x16a   : > { %v696_v13 = vpop.permute.xlu1 %695  ;;  %v690_v14 = vpop.permute.xlu0 %689  ;;  %v3451_v28 = vperm.slane %v506_v19, %v3370_v57  ;;  %v949_v30 = vrot.slane %v3427_v61, 4  ;;  %v3458_v33 = vperm.slane %v960_v10, %v3341_v31  ;;  %v3472_v43 = vperm.slane %v518_v26, %v3370_v57 }
 0x16b   : > { %v504_v34 = vsel %vm455_vm1, %v503_v18, %v462_v27  ;;  %v516_v37 = vsel %vm455_vm1, %v515_v22, %v466_v32  ;;  %v3462_v38 = vpop.permute.xlu2 %451  ;;  %v2785_v39 = vpack.i.bf16 %v696_v13, %v3333_v23  ;;  %v835_v40 = vrot.slane %v690_v14, 4 }
 0x16c   : > { %v3466_v42 = vperm.slane %v504_v34, %v3370_v57  ;;  %v3469_v12 = vperm.slane %v516_v37, %v3370_v57  ;;  %v3475_v46 = vperm.slane %v948_v16, %v3341_v31  ;;  %v838_v32 = vsel %vm455_vm1, %v690_v14, %v837_v45 }
 0x16d   : > { %v836_v27 = vsel %vm455_vm1, %v835_v40, %v3318_v21  ;;  %2786 = vrot.lane.b32.xlu1 %v2785_v39, %s3085_s20  ;;  %v972_v23 = vsel %vm455_vm1, %v971_v17, %v3454_v29  ;;  %v984_v47 = vsel %vm455_vm1, %v983_v11, %v3443_v15  ;;  %v491_v48 = vrot.slane %v3462_v38, 4 }
 0x16e   : > { %v847_v51 = vrot.slane %v696_v13, 4  ;;  %v842_v52 = vperm.slane %v836_v27, %v3341_v31  ;;  %v973_v54 = vrot.slane %v3454_v29, 4  ;;  %v557_v55 = vrot.slane %v3451_v28, 4 }
 0x16f   : > { %v846_v21 = vperm.slane %v838_v32, %v3341_v31  ;;  %v3491_v45 = vperm.slane %v984_v47, %v3341_v31  ;;  %v995_v56 = vrot.slane %v3458_v33, 4  ;;  %v553_v58 = vrot.slane %v3466_v42, 4 }
 0x170   : > { %v561_v61 = vrot.slane %v3469_v12, 4  ;;  %v565_v63 = vrot.slane %v3472_v43, 4  ;;  %v3498_v4 = vperm.slane %v972_v23, %v3341_v31  ;;  %v885_v16 = vrot.slane %v842_v52, 4 }
 0x171   : > { %v897_v22 = vrot.slane %v846_v21, 4  ;;  %v996_v34 = vsel %vm455_vm1, %v995_v56, %v3475_v46  ;;  %v962_v23 = vsel %vm455_vm1, %v3408_v20, %v961_v1 }
 0x172   : > { %v702_v0 = vpop.permute.xlu1 %701  ;;  %v684_v3 = vpop.permute.xlu0 %683 }
 0x173   : > { %v860_v7 = vsel %vm455_vm1, %v859_v53, %v702_v0  ;;  %v861_v8 = vrot.slane %v702_v0, 4  ;;  %v2780_v10 = vpack.i.bf16 %v3335_v24, %v702_v0  ;;  %v848_v11 = vsel %vm455_vm1, %v847_v51, %v684_v3 }
 0x174   : > { %v849_v17 = vrot.slane %v684_v3, 4  ;;  %v854_v18 = vperm.slane %v848_v11, %v3341_v31  ;;  %v2775_v19 = vpack.i.bf16 %v690_v14, %v684_v3  ;;  %v1019_v53 = vrot.slane %v3491_v45, 4 }
 0x175   : > { %v862_v26 = vsel %vm455_vm1, %v3379_v2, %v861_v8  ;;  %2781 = vrot.lane.b32.xlu0 %v2780_v10, %s3085_s20  ;;  %v866_v24 = vperm.slane %v860_v7, %v3341_v31  ;;  %v950_v14 = vsel %vm455_vm1, %v3416_v49, %v949_v30  ;;  %v1002_v51 = vperm.slane %v996_v34, %v3370_v57 }
 0x176   : > { %v850_v37 = vsel %vm455_vm1, %v696_v13, %v849_v17  ;;  %v883_v39 = vrot.slane %v854_v18, 4  ;;  %2776 = vrot.lane.b32.xlu2 %v2775_v19, %s3085_s20  ;;  %v886_v27 = vsel %vm455_vm1, %v854_v18, %v885_v16  ;;  %v1020_v32 = vsel %vm455_vm1, %v1019_v53, %v3498_v4 }
 0x177   : > { %v858_v40 = vperm.slane %v850_v37, %v3341_v31  ;;  %v870_v13 = vperm.slane %v862_v26, %v3341_v31  ;;  %v1026_v49 = vperm.slane %v1020_v32, %v3370_v57  ;;  %v894_v56 = vperm.slane %v886_v27, %v3370_v57 }
 0x178   : > { %v884_v47 = vsel %vm455_vm1, %v883_v39, %v842_v52  ;;  %v909_v50 = vrot.slane %v866_v24, 4  ;;  %v985_v52 = vrot.slane %v3443_v15, 4  ;;  %v3539_v8 = vperm.slane %v950_v14, %v3341_v31 }
 0x179   : > { %v3528_v30 = vperm.slane %v884_v47, %v3370_v57  ;;  %v895_v0 = vrot.slane %v858_v40, 4  ;;  %v898_v3 = vsel %vm455_vm1, %v858_v40, %v897_v22  ;;  %v3546_v17 = vperm.slane %v962_v23, %v3341_v31 }
 0x17a   : > { %v3533_v7 = vperm.slane %v898_v3, %v3370_v57  ;;  %v3535_v20 = vpop.permute.xlu1 %719  ;;  %v708_v1 = vpop.permute.xlu0 %707  ;;  %v921_v18 = vrot.slane %v870_v13, 4  ;;  %v1043_v26 = vrot.slane %v1026_v49, 4  ;;  %v937_v34 = vrot.slane %v894_v56, 4 }
 0x17b   : > { %v896_v10 = vsel %vm455_vm1, %v895_v0, %v846_v21  ;;  %v871_v11 = vrot.slane %v3535_v20, 4  ;;  %v2805_v16 = vpack.i.bf16 %v3356_v41, %v3535_v20  ;;  %v873_v19 = vrot.slane %v708_v1, 4 }
 0x17c   : > { %v2790_v22 = vpack.i.bf16 %v708_v1, %v3347_v35  ;;  %v933_v15 = vrot.slane %v3528_v30, 4  ;;  %v1045_v37 = vrot.slane %v1002_v51, 4  ;;  %v902_v21 = vperm.slane %v896_v10, %v3370_v57 }
 0x17d   : > { %v872_v53 = vsel %vm455_vm1, %v871_v11, %v708_v1  ;;  %v945_v39 = vrot.slane %v3533_v7, 4  ;;  %v874_v14 = vsel %vm455_vm1, %v3535_v20, %v873_v19  ;;  %v974_v27 = vsel %vm455_vm1, %v3430_v62, %v973_v54 }
 0x17e   : > { %v878_v40 = vperm.slane %v872_v53, %v3341_v31  ;;  %2791 = vrot.lane.b32.xlu0 %v2790_v22, %s3085_s20  ;;  %v882_v35 = vperm.slane %v874_v14, %v3341_v31  ;;  %v986_v32 = vsel %vm455_vm1, %v3424_v60, %v985_v52  ;;  %v1007_v23 = vrot.slane %v3546_v17, 4 }
 0x17f   : > { %v3567_v3 = vsel %vm455_vm1, %v1043_v26, %v1002_v51  ;;  %v3570_v1 = vperm.slane %v986_v32, %v3341_v31  ;;  %v941_v60 = vrot.slane %v902_v21, 4  ;;  %v3581_v51 = vperm.slane %v974_v27, %v3341_v31 }
 0x180   : > { %v907_v47 = vrot.slane %v878_v40, 4  ;;  %v910_v0 = vsel %vm455_vm1, %v878_v40, %v909_v50  ;;  %v919_v29 = vrot.slane %v882_v35, 4  ;;  %v922_v11 = vsel %vm455_vm1, %v882_v35, %v921_v18 }
 0x181   : > { %v918_v10 = vperm.slane %v910_v0, %v3370_v57  ;;  %v1008_v62 = vsel %vm455_vm1, %v1007_v23, %v3539_v8  ;;  %v3578_v50 = vsel %vm455_vm1, %v1026_v49, %v1045_v37  ;;  %v930_v26 = vperm.slane %v922_v11, %v3370_v57 }
 0x182   : > { %v908_v54 = vsel %vm455_vm1, %v907_v47, %v866_v24  ;;  %v446_v52 = vpop.permute.xlu1 %445  ;;  %v920_v22 = vsel %vm455_vm1, %v919_v29, %v870_v13  ;;  %v449_v53 = vpop.permute.xlu0 %448  ;;  %v1009_v40 = vrot.slane %v3539_v8, 4  ;;  %v3589_v24 = vperm.slane %v1008_v62, %v3370_v57 }
 0x183   : > { %v914_v19 = vperm.slane %v908_v54, %v3370_v57  ;;  %v935_v18 = vrot.slane %v918_v10, 4  ;;  %v926_v14 = vperm.slane %v920_v22, %v3370_v57  ;;  %v1031_v49 = vrot.slane %v3570_v1, 4 }
 0x184   : > { %v3593_v35 = vsel %vm455_vm1, %v918_v10, %v937_v34  ;;  %v492_v13 = vsel %vm455_vm1, %v491_v48, %v446_v52  ;;  %v493_v27 = vrot.slane %v446_v52, 4  ;;  %v479_v47 = vrot.slane %v449_v53, 4 }
 0x185   : > { %v931_v37 = vrot.slane %v914_v19, 4  ;;  %v939_v32 = vrot.slane %v926_v14, 4  ;;  %v498_v23 = vperm.slane %v492_v13, %v3341_v31  ;;  %v482_v0 = vsel %vm455_vm1, %v449_v53, %v481_v6 }
 0x186   : > { %v936_v29 = vsel %vm455_vm1, %v935_v18, %v894_v56  ;;  %v943_v11 = vrot.slane %v930_v26, 4  ;;  %v494_v34 = vsel %vm455_vm1, %v3462_v38, %v493_v27  ;;  %v490_v10 = vperm.slane %v482_v0, %v3341_v31 }
 0x187   : > { %v3607_v62 = vsel %vm455_vm1, %v930_v26, %v945_v39  ;;  %v502_v48 = vperm.slane %v494_v34, %v3341_v31  ;;  %v527_v54 = vrot.slane %v498_v23, 4  ;;  %v480_v52 = vsel %vm455_vm1, %v479_v47, %v3411_v44 }
 0x188   : > { %v1071_v22 = vrot.slane %v3593_v35, 4  ;;  %v486_v6 = vperm.slane %v480_v52, %v3341_v31  ;;  %v541_v56 = vrot.slane %v490_v10, 4  ;;  %v932_v18 = vsel %vm455_vm1, %v931_v37, %v3528_v30 }
 0x189   : > { %v539_v38 = vrot.slane %v502_v48, 4  ;;  %v934_v53 = vsel %vm455_vm1, %v914_v19, %v933_v15  ;;  %v940_v39 = vsel %vm455_vm1, %v939_v32, %v902_v21  ;;  %v1059_v26 = vrot.slane %v936_v29, 4 }
 0x18a   : > { %v528_v13 = vsel %vm455_vm1, %v527_v54, %v486_v6  ;;  %v529_v27 = vrot.slane %v486_v6, 4  ;;  %v542_v0 = vsel %vm455_vm1, %v502_v48, %v541_v56  ;;  %v942_v44 = vsel %vm455_vm1, %v926_v14, %v941_v60 }
 0x18b   : > { %v3622_v47 = vperm.slane %v528_v13, %v3370_v57  ;;  %v540_v34 = vsel %vm455_vm1, %v539_v38, %v490_v10  ;;  %v550_v30 = vperm.slane %v542_v0, %v3370_v57  ;;  %v944_v15 = vsel %vm455_vm1, %v943_v11, %v3533_v7 }
 0x18c   : > { %v530_v21 = vsel %vm455_vm1, %v498_v23, %v529_v27  ;;  %v546_v19 = vperm.slane %v540_v34, %v3370_v57  ;;  %v1061_v37 = vrot.slane %v932_v18, 4  ;;  %v1072_v32 = vsel %vm455_vm1, %v1071_v22, %v934_v53 }
 0x18d   : > { %v3632_v48 = vperm.slane %v530_v21, %v3370_v57  ;;  %v563_v60 = vrot.slane %v550_v30, 4  ;;  %v566_v14 = vsel %vm455_vm1, %v550_v30, %v565_v63  ;;  %v1060_v10 = vsel %vm455_vm1, %v1059_v26, %v932_v18 }
 0x18e   : > { %v551_v54 = vrot.slane %v3622_v47, 4  ;;  %v559_v7 = vrot.slane %v546_v19, 4  ;;  %v562_v23 = vsel %vm455_vm1, %v546_v19, %v561_v61  ;;  %v603_v11 = vrot.slane %v566_v14, 4 }
 0x18f   : > { %v555_v52 = vrot.slane %v3632_v48, 4  ;;  %v3647_v22 = vsel %vm455_vm1, %v3632_v48, %v557_v55  ;;  %v3651_v63 = vsel %vm455_vm1, %v563_v60, %v3472_v43  ;;  %v605_v6 = vrot.slane %v562_v23, 4 }
 0x190   : > { %v3655_v56 = vsel %vm455_vm1, %v559_v7, %v3469_v12  ;;  %v591_v61 = vrot.slane %v3651_v63, 4  ;;  %v3659_v18 = vsel %vm455_vm1, %v603_v11, %v562_v23  ;;  %v1066_v38 = vperm.slane %v1060_v10, %v3341_v31 }
 0x191   : > { %v593_v26 = vrot.slane %v3655_v56, 4  ;;  %v3664_v55 = vsel %vm455_vm1, %v566_v14, %v605_v6  ;;  %v1073_v13 = vrot.slane %v934_v53, 4  ;;  %v1078_v43 = vperm.slane %v1072_v32, %v3341_v31 }
 0x192   : > { %v1083_v27 = vrot.slane %v944_v15, 4  ;;  %v1085_v0 = vrot.slane %v940_v39, 4  ;;  %v1095_v12 = vrot.slane %v3607_v62, 4  ;;  %v1097_v34 = vrot.slane %v942_v44, 4 }
 0x193   : > { %v1107_v30 = vrot.slane %v1078_v43, 4  ;;  %v1062_v21 = vsel %vm455_vm1, %v936_v29, %v1061_v37  ;;  %v1074_v19 = vsel %vm455_vm1, %v3593_v35, %v1073_v13  ;;  %v1109_v60 = vrot.slane %v1066_v38, 4 }
 0x194   : > { %v1084_v10 = vsel %vm455_vm1, %v1083_v27, %v940_v39  ;;  %v1096_v14 = vsel %vm455_vm1, %v1095_v12, %v942_v44  ;;  %v1070_v53 = vperm.slane %v1062_v21, %v3341_v31  ;;  %v1082_v32 = vperm.slane %v1074_v19, %v3341_v31 }
 0x195   : > { %v1090_v7 = vperm.slane %v1084_v10, %v3341_v31  ;;  %v1102_v23 = vperm.slane %v1096_v14, %v3341_v31  ;;  %v1108_v11 = vsel %vm455_vm1, %v1107_v30, %v1066_v38  ;;  %v1086_v29 = vsel %vm455_vm1, %v944_v15, %v1085_v0 }
 0x196   : > { %v1114_v37 = vperm.slane %v1108_v11, %v3370_v57  ;;  %v1094_v35 = vperm.slane %v1086_v29, %v3341_v31  ;;  %v1098_v39 = vsel %vm455_vm1, %v3607_v62, %v1097_v34  ;;  %v1119_v44 = vrot.slane %v1082_v32, 4 }
 0x197   : > { %v1131_v6 = vrot.slane %v1102_v23, 4  ;;  %v1106_v13 = vperm.slane %v1098_v39, %v3341_v31  ;;  %v1121_v27 = vrot.slane %v1070_v53, 4  ;;  %v1110_v12 = vsel %vm455_vm1, %v1078_v43, %v1109_v60 }
 0x198   : > { %v1157_v21 = vrot.slane %v1114_v37, 4  ;;  %v1120_v19 = vsel %vm455_vm1, %v1119_v44, %v1070_v53  ;;  %v1118_v38 = vperm.slane %v1110_v12, %v3370_v57  ;;  %v1133_v15 = vrot.slane %v1090_v7, 4 }
 0x199   : > { %v1132_v0 = vsel %vm455_vm1, %v1131_v6, %v1090_v7  ;;  %v3689_v30 = vperm.slane %v1120_v19, %v3370_v57  ;;  %v1143_v10 = vrot.slane %v1106_v13, 4  ;;  %v1032_v62 = vsel %vm455_vm1, %v1031_v49, %v3581_v51 }
 0x19a   : > { %v1138_v34 = vperm.slane %v1132_v0, %v3370_v57  ;;  %v1134_v43 = vsel %vm455_vm1, %v1102_v23, %v1133_v15  ;;  %v1161_v60 = vrot.slane %v1118_v38, 4  ;;  %v3698_v14 = vperm.slane %v1032_v62, %v3370_v57 }
 0x19b   : > { %v1144_v53 = vsel %vm455_vm1, %v1143_v10, %v1094_v35  ;;  %v1165_v7 = vrot.slane %v3689_v30, 4  ;;  %v1142_v11 = vperm.slane %v1134_v43, %v3370_v57  ;;  %v1122_v29 = vsel %vm455_vm1, %v1082_v32, %v1121_v27 }
 0x19c   : > { %v1155_v39 = vrot.slane %v1138_v34, 4  ;;  %v1158_v44 = vsel %vm455_vm1, %v1138_v34, %v1157_v21  ;;  %v3706_v49 = vperm.slane %v1144_v53, %v3370_v57  ;;  %v1051_v23 = vrot.slane %v3698_v14, 4 }
 0x19d   : > { %2634 = vmatpush.xpose.msk.msra.mxu3 %vm1667_vm2, %v1158_v44  ;;  %v1159_v6 = vrot.slane %v1142_v11, 4  ;;  %v1162_v12 = vsel %vm455_vm1, %v1142_v11, %v1161_v60  ;;  %v3712_v19 = vperm.slane %v1122_v29, %v3370_v57  ;;  %v1145_v15 = vrot.slane %v1094_v35, 4 }
 0x19e   : > { %v1156_v0 = vsel %vm455_vm1, %v1155_v39, %v1114_v37  ;;  %v1163_v32 = vrot.slane %v3706_v49, 4  ;;  %v1052_v27 = vsel %vm455_vm1, %v1051_v23, %v3589_v24  ;;  %v552_v21 = vsel %vm455_vm1, %v551_v54, %v3466_v42 }
 0x19f   : > { %2631 = vmatpush.xpose.msk.msra.mxu2 %vm1667_vm2, %v1156_v0  ;;  %v1160_v10 = vsel %vm455_vm1, %v1159_v6, %v1118_v38  ;;  %v1146_v62 = vsel %vm455_vm1, %v1106_v13, %v1145_v15  ;;  %v1169_v35 = vrot.slane %v3712_v19, 4  ;;  %v554_v37 = vsel %vm455_vm1, %v3622_v47, %v553_v58 }
 0x1a0   : > { %v1164_v34 = vsel %vm455_vm1, %v1163_v32, %v3689_v30  ;;  %v3733_v43 = vperm.slane %v1146_v62, %v3370_v57  ;;  %v556_v54 = vsel %vm455_vm1, %v555_v52, %v3451_v28  ;;  %v569_v38 = vrot.slane %v552_v21, 4 }
 0x1a1   : > { %2643 = vmatpush.xpose.msk.msrb.mxu0 %vm1667_vm2, %v1164_v34  ;;  %2635 = vmatpush.xpose.msk.msra.mxu3 %vm1667_vm2, %v3578_v50  ;;  %v567_v42 = vrot.slane %v556_v54, 4  ;;  %v579_v58 = vrot.slane %v3647_v22, 4  ;;  %v581_v47 = vrot.slane %v554_v37, 4  ;;  %v592_v13 = vsel %vm455_vm1, %v591_v61, %v3655_v56 }
 0x1a2   : > { %v1170_v28 = vsel %vm455_vm1, %v3733_v43, %v1169_v35  ;;  %v3751_v48 = vperm.slane %v592_v13, %v3341_v31  ;;  %v3755_v50 = vperm.slane %v3659_v18, %v3341_v31  ;;  %v997_v52 = vrot.slane %v3475_v46, 4 }
 0x1a3   : > { %2632 = vmatpush.xpose.msk.msra.mxu2 %vm1667_vm2, %v3567_v3  ;;  %v568_v60 = vsel %vm455_vm1, %v567_v42, %v552_v21  ;;  %v580_v61 = vsel %vm455_vm1, %v579_v58, %v554_v37  ;;  %v1021_v53 = vrot.slane %v3498_v4, 4  ;;  %v570_v11 = vsel %vm455_vm1, %v556_v54, %v569_v38 }
 0x1a4   : > { %v574_v29 = vperm.slane %v568_v60, %v3341_v31  ;;  %v586_v18 = vperm.slane %v580_v61, %v3341_v31  ;;  %v639_v39 = vrot.slane %v3755_v50, 4  ;;  %v998_v46 = vsel %vm455_vm1, %v3458_v33, %v997_v52 }
 0x1a5   : > { %2640 = vmatpush.xpose.msk.msrb.mxu3 %vm1667_vm2, %v1162_v12  ;;  %2644 = vmatpush.xpose.msk.msrb.mxu0 %vm1667_vm2, %v1052_v27  ;;  %v1006_v3 = vperm.slane %v998_v46, %v3370_v57  ;;  %v1022_v4 = vsel %vm455_vm1, %v3491_v45, %v1021_v53  ;;  %v578_v44 = vperm.slane %v570_v11, %v3341_v31  ;;  %v1167_v58 = vrot.slane %v3733_v43, 4 }
 0x1a6   : > { %v582_v23 = vsel %vm455_vm1, %v3647_v22, %v581_v47  ;;  %v615_v6 = vrot.slane %v586_v18, 4  ;;  %v640_v12 = vsel %vm455_vm1, %v639_v39, %v3751_v48  ;;  %v1030_v33 = vperm.slane %v1022_v4, %v3370_v57 }
 0x1a7   : > { %2637 = vmatpush.xpose.msk.msrb.mxu2 %vm1667_vm2, %v1160_v10  ;;  %v590_v15 = vperm.slane %v582_v23, %v3341_v31  ;;  %v646_v0 = vperm.slane %v640_v12, %v3370_v57  ;;  %v1049_v32 = vrot.slane %v1006_v3, 4  ;;  %v594_v45 = vsel %vm455_vm1, %v3651_v63, %v593_v26 }
 0x1a8   : > { %v614_v22 = vperm.slane %v3664_v55, %v3341_v31  ;;  %v616_v27 = vsel %vm455_vm1, %v615_v6, %v574_v29  ;;  %v1047_v21 = vrot.slane %v1030_v33, 4  ;;  %v602_v10 = vperm.slane %v594_v45, %v3341_v31 }
 0x1a9   : > { %2652 = vmatpush.xpose.msk.msra.mxu0 %vm1667_vm2, %v1170_v28  ;;  %v627_v62 = vrot.slane %v590_v15, 4  ;;  %v622_v35 = vperm.slane %v616_v27, %v3370_v57  ;;  %v663_v37 = vrot.slane %v646_v0, 4  ;;  %v1050_v34 = vsel %vm455_vm1, %v1030_v33, %v1049_v32 }
 0x1aa   : > { %v1048_v54 = vsel %vm455_vm1, %v1047_v21, %v1006_v3  ;;  %2641 = vmatpush.xpose.msk.msrb.mxu3 %vm1667_vm2, %v1050_v34  ;;  %v629_v56 = vrot.slane %v578_v44, 4  ;;  %v651_v26 = vrot.slane %v614_v22, 4  ;;  %v1166_v42 = vsel %vm455_vm1, %v3706_v49, %v1165_v7 }
 0x1ab   : > { %v628_v63 = vsel %vm455_vm1, %v627_v62, %v578_v44  ;;  %v664_v55 = vsel %vm455_vm1, %v663_v37, %v622_v35  ;;  %2638 = vmatpush.xpose.msk.msrb.mxu2 %vm1667_vm2, %v1048_v54  ;;  %v665_v38 = vrot.slane %v622_v35, 4  ;;  %v1010_v13 = vsel %vm455_vm1, %v3546_v17, %v1009_v40 }
 0x1ac   : > { %2633 = vmatmul.msk.f32.vlgmr.msra.gmra.mxu2 %vm1667_vm2, %v664_v55  ;;  %v652_v47 = vsel %vm455_vm1, %v651_v26, %v602_v10  ;;  %v1033_v28 = vrot.slane %v3581_v51, 4  ;;  %v1053_v52 = vrot.slane %v3589_v24, 4  ;;  %v634_v60 = vperm.slane %v628_v63, %v3370_v57 }
 0x1ad   : > { %v666_v30 = vsel %vm455_vm1, %v646_v0, %v665_v38  ;;  %v658_v7 = vperm.slane %v652_v47, %v3370_v57  ;;  %v1168_v49 = vsel %vm455_vm1, %v1167_v58, %v3712_v19  ;;  %v1018_v8 = vperm.slane %v1010_v13, %v3370_v57 }
 0x1ae   : > { %2636 = vmatmul.msk.f32.vlgmr.msra.gmra.mxu3 %vm1667_vm2, %v666_v30  ;;  %v1034_v17 = vsel %vm455_vm1, %v3570_v1, %v1033_v28  ;;  %v1054_v51 = vsel %vm455_vm1, %v3698_v14, %v1053_v52  ;;  %v617_v40 = vrot.slane %v574_v29, 4  ;;  %v641_v61 = vrot.slane %v3751_v48, 4 }
 0x1af   : > { %2646 = vmatpush.xpose.msk.msra.mxu2 %vm1667_vm2, %v1166_v42  ;;  %v671_v24 = vrot.slane %v658_v7, 4  ;;  %2649 = vmatpush.xpose.msk.msra.mxu3 %vm1667_vm2, %v1168_v49  ;;  %v1042_v43 = vperm.slane %v1034_v17, %v3370_v57  ;;  %v630_v19 = vsel %vm455_vm1, %v590_v15, %v629_v56  ;;  %v1057_v53 = vrot.slane %v1018_v8, 4 }
 0x1b0   : > { %v618_v11 = vsel %vm455_vm1, %v586_v18, %v617_v40  ;;  %v638_v39 = vperm.slane %v630_v19, %v3370_v57  ;;  %v653_v46 = vrot.slane %v602_v10, 4  ;;  %v642_v3 = vsel %vm455_vm1, %v3755_v50, %v641_v61 }
 0x1b1   : > { %v672_v1 = vsel %vm455_vm1, %v671_v24, %v634_v60  ;;  %v1055_v14 = vrot.slane %v1042_v43, 4  ;;  %v626_v29 = vperm.slane %v618_v11, %v3370_v57  ;;  %v1058_v48 = vsel %vm455_vm1, %v1042_v43, %v1057_v53 }
 0x1b2   : > { %2645 = vmatmul.msk.f32.vlgmr.msrb.gmra.mxu0 %vm1667_vm2, %v672_v1  ;;  %v650_v4 = vperm.slane %v642_v3, %v3370_v57  ;;  %v654_v18 = vsel %vm455_vm1, %v614_v22, %v653_v46  ;;  %v677_v33 = vrot.slane %v638_v39, 4  ;;  %v673_v45 = vrot.slane %v634_v60, 4  ;;  %v3885_v60 = vpop.permute.xlu1 %2771 }
 0x1b3   : > { %2647 = vmatpush.xpose.msk.msra.mxu2 %vm1667_vm2, %v1054_v51  ;;  %2653 = vmatpush.xpose.msk.msra.mxu0 %vm1667_vm2, %v1058_v48  ;;  %v1056_v44 = vsel %vm455_vm1, %v1055_v14, %v1018_v8  ;;  %v669_v23 = vrot.slane %v626_v29, 4  ;;  %v662_v50 = vperm.slane %v654_v18, %v3370_v57  ;;  %v2773_v43 = vunpack.i.l.bf16 %v3885_v60 }
 0x1b4   : > { %2650 = vmatpush.xpose.msk.msra.mxu3 %vm1667_vm2, %v1056_v44  ;;  %v667_v6 = vrot.slane %v650_v4, 4  ;;  %v674_v27 = vsel %vm455_vm1, %v658_v7, %v673_v45  ;;  %v2774_v14 = vunpack.i.h.bf16 %v3885_v60 }
 0x1b5   : > { %v670_v12 = vsel %vm455_vm1, %v650_v4, %v669_v23  ;;  %v678_v0 = vsel %vm455_vm1, %v662_v50, %v677_v33  ;;  %v675_v32 = vrot.slane %v662_v50, 4 }
 0x1b6   : > { %v668_v15 = vsel %vm455_vm1, %v667_v6, %v626_v29  ;;  %2642 = vmatmul.msk.f32.vlgmr.msrb.gmra.mxu3 %vm1667_vm2, %v670_v12  ;;  %v1333_v29 = vrot.slane %v2773_v43, 4 }
 0x1b7   : > { %2639 = vmatmul.msk.f32.vlgmr.msrb.gmra.mxu2 %vm1667_vm2, %v668_v15  ;;  %v676_v22 = vsel %vm455_vm1, %v675_v32, %v638_v39 }
 0x1ba   : > { %2654 = vmatmul.msk.f32.vlgmr.msra.gmra.mxu0 %vm1667_vm2, %v678_v0 }
 0x1be   : > { %2651 = vmatmul.msk.f32.vlgmr.msra.gmra.mxu3 %vm1667_vm2, %v676_v22 }
 0x1bf   : > { %2648 = vmatmul.msk.f32.vlgmr.msra.gmra.mxu2 %vm1667_vm2, %v674_v27 }
 0x1d0   : > { %v2777_v52 = vpop.permute.xlu2 %2776 }
 0x1d1   : > { %v2779_v2 = vunpack.i.h.bf16 %v2777_v52  ;;  %v2778_v40 = vunpack.i.l.bf16 %v2777_v52 }
 0x1d3   : > { %v1331_v51 = vrot.slane %v2779_v2, 4  ;;  %v1345_v39 = vrot.slane %v2778_v40, 4  ;;  %v1334_v50 = vsel %vm455_vm1, %v2779_v2, %v1333_v29 }
 0x1d5   : > { %v1332_v11 = vsel %vm455_vm1, %v1331_v51, %v2773_v43 }
 0x1d6   : > { %v1338_v33 = vperm.slane %v1332_v11, %v3341_v31 }
 0x1e7   : > { %v3881_v28 = vpop.permute.xlu0 %2781 }
 0x1e8   : > { %v2784_v45 = vunpack.i.h.bf16 %v3881_v28 }
 0x1f0   : > { %v3883_v30 = vpop.permute.xlu0 %2791 }
 0x22f   : > { %v3852_v21 = vpop.f32.mrf.mxu0  ;;  %v1694_v10 = vpop.f32.mrf.mxu2 }
 0x230   : > { %v1913_v62 = vsel %vm1900_vm3, %v3852_v21, -inf  ;;  %v1901_v35 = vsel %vm1900_vm3, %v1694_v10, -inf }
 0x231   : > { %1914 = vmax.xlane.f32.xlu2 %v1913_v62  ;;  %v1723_v37 = vpop.f32.mrf.mxu3  ;;  %1902 = vmax.xlane.f32.xlu0 %v1901_v35 }
 0x232   : > { %v1904_v54 = vsel %vm1900_vm3, %v1723_v37, -inf }
 0x237   : > { %v3857_v34 = vpop.f32.mrf.mxu0 }
 0x238   : > { %v1922_v63 = vsel %vm1900_vm3, %v3857_v34, -inf }
 0x239   : > { %1905 = vmax.xlane.f32.xlu2 %v1904_v54  ;;  %v1781_v56 = vpop.f32.mrf.mxu3  ;;  %1923 = vmax.xlane.f32.xlu0 %v1922_v63 }
 0x23a   : > { %v1752_v26 = vpop.f32.mrf.mxu2  ;;  %v1910_v38 = vsel %vm1900_vm3, %v1781_v56, -inf }
 0x23b   : > { %v1907_v55 = vsel %vm1900_vm3, %v1752_v26, -inf }
 0x23c   : > { %1908 = vmax.xlane.f32.xlu1 %v1907_v55 }
 0x241   : > { %1911 = vmax.xlane.f32.xlu2 %v1910_v38  ;;  %v1868_v42 = vpop.f32.mrf.mxu3 }
 0x242   : > { %v3864_v58 = vpop.f32.mrf.mxu2  ;;  %v1919_v47 = vsel %vm1900_vm3, %v1868_v42, -inf }
 0x243   : > { %v1916_v13 = vsel %vm1900_vm3, %v3864_v58, -inf  ;;  %1920 = vmax.xlane.f32.xlu0 %v1919_v47  ;;  %v1381_v47 = vrot.slane %v1338_v33, 4 }
 0x244   : > { %1917 = vmax.xlane.f32.xlu1 %v1916_v13 }
 0x257   : > { %2806 = vrot.lane.b32.xlu0 %v2805_v16, %s3085_s20  ;;  %v2787_v16 = vpop.permute.xlu1 %2786 }
 0x258   : > { %v2789_v61 = vunpack.i.h.bf16 %v2787_v16  ;;  %v2788_v46 = vunpack.i.l.bf16 %v2787_v16 }
 0x259   : > { %2796 = vrot.lane.b32.xlu2 %v2795_v9, %s3085_s20 }
 0x25a   : > { %v1343_v3 = vrot.slane %v2789_v61, 4  ;;  %v1346_v18 = vsel %vm455_vm1, %v2789_v61, %v1345_v39  ;;  %v1219_v32 = vrot.slane %v2788_v46, 4 }
 0x25d   : > { %2801 = vrot.lane.b32.xlu1 %v2800_v5, %s3085_s20  ;;  %s3007_s20 = sshra.s32 %s2489_s4, 4  ;;  %s3008_s20 = int_to_ptr.hbm [resolvable:$true] %s3007_s20 }
 0x25e   : > { %p3014_p7 = scmp.lt.s32.totalorder %s3008_s20, %s4330_s6 }
 0x2a4   : > { %v1915_v7 = vpop.xlane.xlu2 %1914  ;;  %v1903_v41 = vpop.xlane.xlu0 %1902 }
 0x2a5   : > { %v1925_v20 = vsub.f32 %v1694_v10, %v1903_v41  ;;  %v1929_v44 = vsub.f32 %v3852_v21, %v1915_v7  ;;  %v1344_v21 = vsel %vm455_vm1, %v1343_v3, %v2778_v40  ;;  %v1354_v10 = vperm.slane %v1346_v18, %v3341_v31 }
 0x2a6   : > { %v1350_v38 = vperm.slane %v1344_v21, %v3341_v31  ;;  %v2794_v18 = vunpack.i.h.bf16 %v3883_v30  ;;  %v2793_v21 = vunpack.i.l.bf16 %v3883_v30 }
 0x2a7   : > { %v1933_v49 = vmul.f32 1.442695, %v1925_v20  ;;  %v1941_v54 = vmul.f32 1.442695, %v1929_v44  ;;  %v1391_v13 = vrot.slane %v1354_v10, 4 }
 0x2a9   : > { %2811 = vpow2.f32 %v1933_v49  ;;  %v2783_v49 = vunpack.i.l.bf16 %v3881_v28 }
 0x2ab   : > { %v1357_v39 = vrot.slane %v2783_v49, 4 }
 0x2ac   : > { %v1906_v36 = vpop.xlane.xlu2 %1905  ;;  %v1924_v8 = vpop.xlane.xlu0 %1923 }
 0x2ad   : > { %v1926_v9 = vsub.f32 %v1723_v37, %v1906_v36  ;;  %v1932_v62 = vsub.f32 %v3857_v34, %v1924_v8  ;;  %v1221_v37 = vrot.slane %v2774_v14, 4  ;;  %v1220_v34 = vsel %vm455_vm1, %v1219_v32, %v2774_v14 }
 0x2ae   : > { %v1382_v8 = vsel %vm455_vm1, %v1350_v38, %v1381_v47  ;;  %v1226_v40 = vperm.slane %v1220_v34, %v3341_v31 }
 0x2af   : > { %v1935_v17 = vmul.f32 1.442695, %v1926_v9  ;;  %v1909_v25 = vpop.xlane.xlu1 %1908  ;;  %v3887_v59 = vpop.eup %2811  ;;  %v1222_v55 = vsel %vm455_vm1, %v2788_v46, %v1221_v37  ;;  %v1947_v52 = vmul.f32 1.442695, %v1932_v62  ;;  %v1379_v9 = vrot.slane %v1350_v38, 4 }
 0x2b0   : > { %v1927_v5 = vsub.f32 %v1752_v26, %v1909_v25  ;;  %v1949_v24 = vsel %vm1900_vm3, %v3887_v59, 0.0  ;;  %v1230_v16 = vperm.slane %v1222_v55, %v3341_v31  ;;  %v1369_v37 = vrot.slane %v2794_v18, 4 }
 0x2b1   : > { %2813 = vpow2.f32 %v1935_v17  ;;  %1950 = vadd.xlane.f32.xlu2 %v1949_v24  ;;  %v1380_v14 = vsel %vm455_vm1, %v1379_v9, %v1338_v33 }
 0x2b2   : > { %v1937_v19 = vmul.f32 1.442695, %v1927_v5  ;;  %v3956_v33 = vperm.slane %v1380_v14, %v3370_v57 }
 0x2b4   : > { %2815 = vpow2.f32 %v1937_v19  ;;  %v1912_v53 = vpop.xlane.xlu2 %1911 }
 0x2b5   : > { %v1928_v1 = vsub.f32 %v1781_v56, %v1912_v53  ;;  %v1342_v56 = vperm.slane %v1334_v50, %v3341_v31  ;;  %v3937_v53 = vperm.slane %v1382_v8, %v3370_v57 }
 0x2b6   : > { %v1921_v48 = vpop.xlane.xlu0 %1920 }
 0x2b7   : > { %v3894_v4 = vpop.eup %2813  ;;  %v1939_v23 = vmul.f32 1.442695, %v1928_v1  ;;  %v1918_v6 = vpop.xlane.xlu1 %1917  ;;  %v1931_v12 = vsub.f32 %v1868_v42, %v1921_v48  ;;  %v1233_v42 = vrot.slane %v2784_v45, 4  ;;  %v1393_v51 = vrot.slane %v1342_v56, 4 }
 0x2b8   : > { %v1930_v15 = vsub.f32 %v3864_v58, %v1918_v6  ;;  %v1952_v0 = vsel %vm1900_vm3, %v3894_v4, 0.0  ;;  %v1392_v28 = vsel %vm455_vm1, %v1391_v13, %v1342_v56  ;;  %v1281_v1 = vrot.slane %v1230_v16, 4 }
 0x2b9   : > { %2817 = vpow2.f32 %v1939_v23  ;;  %1953 = vadd.xlane.f32.xlu0 %v1952_v0  ;;  %v1945_v22 = vmul.f32 1.442695, %v1931_v12  ;;  %v1394_v11 = vsel %vm455_vm1, %v1354_v10, %v1393_v51  ;;  %v3944_v29 = vperm.slane %v1392_v28, %v3370_v57 }
 0x2ba   : > { %v3904_v27 = vpop.eup %2815  ;;  %v1943_v35 = vmul.f32 1.442695, %v1930_v15  ;;  %v1269_v48 = vrot.slane %v1226_v40, 4  ;;  %v3949_v23 = vperm.slane %v1394_v11, %v3370_v57  ;;  %v1433_v0 = vrot.slane %v3937_v53, 4 }
 0x2bb   : > { %2819 = vpow2.f32 %v1945_v22  ;;  %v1955_v63 = vsel %vm1900_vm3, %v3904_v27, 0.0  ;;  %v1437_v22 = vrot.slane %v3944_v29, 4  ;;  %v1429_v13 = vrot.slane %v3956_v33, 4 }
 0x2bc   : > { %2821 = vpow2.f32 %v1943_v35  ;;  %v2797_v26 = vpop.permute.xlu2 %2796  ;;  %1956 = vadd.xlane.f32.xlu1 %v1955_v63 }
 0x2bd   : > { %v2799_v58 = vunpack.i.h.bf16 %v2797_v26  ;;  %2823 = vpow2.f32 %v1941_v54  ;;  %v2798_v20 = vunpack.i.l.bf16 %v2797_v26  ;;  %v1441_v26 = vrot.slane %v3949_v23, 4 }
 0x2be   : > { %2825 = vpow2.f32 %v1947_v52  ;;  %v1245_v52 = vrot.slane %v2793_v21, 4 }
 0x2bf   : > { %v3915_v60 = vpop.eup %2817  ;;  %v1231_v7 = vrot.slane %v2799_v58, 4  ;;  %v1234_v41 = vsel %vm455_vm1, %v2799_v58, %v1233_v42  ;;  %v1355_v43 = vrot.slane %v2798_v20, 4  ;;  %v1358_v44 = vsel %vm455_vm1, %v2798_v20, %v1357_v39 }
 0x2c0   : > { %v1958_v36 = vsel %vm1900_vm3, %v3915_v60, 0.0  ;;  %v1242_v25 = vperm.slane %v1234_v41, %v3341_v31  ;;  %v1366_v62 = vperm.slane %v1358_v44, %v3341_v31 }
 0x2c1   : > { %v3922_v2 = vpop.eup %2819  ;;  %v1232_v17 = vsel %vm455_vm1, %v1231_v7, %v2784_v45  ;;  %1959 = vadd.xlane.f32.xlu2 %v1958_v36  ;;  %v1356_v50 = vsel %vm455_vm1, %v1355_v43, %v2783_v49 }
 0x2c2   : > { %v3927_v5 = vpop.eup %2821  ;;  %v1238_v24 = vperm.slane %v1232_v17, %v3341_v31  ;;  %v1967_v19 = vsel %vm1900_vm3, %v3922_v2, 0.0  ;;  %v1279_v3 = vrot.slane %v1242_v25, 4  ;;  %v1282_v12 = vsel %vm455_vm1, %v1242_v25, %v1281_v1 }
 0x2c3   : > { %v1964_v61 = vsel %vm1900_vm3, %v3927_v5, 0.0  ;;  %v3940_v46 = vpop.eup %2823  ;;  %v3969_v54 = vperm.slane %v1282_v12, %v3370_v57  ;;  %v1362_v63 = vperm.slane %v1356_v50, %v3341_v31  ;;  %v1417_v7 = vrot.slane %v1366_v62, 4 }
 0x2c4   : > { %1965 = vadd.xlane.f32.xlu0 %v1964_v61  ;;  %1968 = vadd.xlane.f32.xlu1 %v1967_v19  ;;  %v1267_v6 = vrot.slane %v1238_v24, 4  ;;  %v3953_v15 = vpop.eup %2825  ;;  %v1270_v32 = vsel %vm455_vm1, %v1238_v24, %v1269_v48  ;;  %v1961_v45 = vsel %vm1900_vm3, %v3940_v46, 0.0  ;;  %v1280_v10 = vsel %vm455_vm1, %v1279_v3, %v1230_v16 }
 0x2c5   : > { %v3976_v30 = vperm.slane %v1270_v32, %v3370_v57  ;;  %v1970_v38 = vsel %vm1900_vm3, %v3953_v15, 0.0  ;;  %v3981_v42 = vperm.slane %v1280_v10, %v3370_v57  ;;  %v1329_v16 = vrot.slane %v3969_v54, 4 }
 0x2c6   : > { %v1268_v55 = vsel %vm455_vm1, %v1267_v6, %v1226_v40  ;;  %v1405_v49 = vrot.slane %v1362_v63, 4 }
 0x2c7   : > { %v3988_v20 = vperm.slane %v1268_v55, %v3370_v57  ;;  %v1321_v9 = vrot.slane %v3976_v30, 4  ;;  %v1325_v40 = vrot.slane %v3981_v42, 4 }
 0x2c9   : > { %1962 = vadd.xlane.f32.xlu2 %v1961_v45  ;;  %v3966_v35 = vpop.permute.xlu0 %2806 }
 0x2ca   : > { %v2808_v56 = vunpack.i.l.bf16 %v3966_v35  ;;  %v2809_v58 = vunpack.i.h.bf16 %v3966_v35 }
 0x2cc   : > { %v1367_v47 = vrot.slane %v2808_v56, 4  ;;  %v1370_v34 = vsel %vm455_vm1, %v2808_v56, %v1369_v37  ;;  %1971 = vadd.xlane.f32.xlu1 %v1970_v38  ;;  %v1255_v28 = vrot.slane %v2809_v58, 4 }
 0x2cd   : > { %v1378_v41 = vperm.slane %v1370_v34, %v3341_v31 }
 0x2ce   : > { %v1368_v36 = vsel %vm455_vm1, %v1367_v47, %v2794_v18 }
 0x2cf   : > { %v1374_v8 = vperm.slane %v1368_v36, %v3341_v31  ;;  %v1415_v17 = vrot.slane %v1378_v41, 4  ;;  %v1418_v25 = vsel %vm455_vm1, %v1378_v41, %v1417_v7  ;;  %v2802_v51 = vpop.permute.xlu1 %2801 }
 0x2d0   : > { %v1426_v24 = vperm.slane %v1418_v25, %v3370_v57  ;;  %v2804_v43 = vunpack.i.h.bf16 %v2802_v51  ;;  %v2803_v39 = vunpack.i.l.bf16 %v2802_v51 }
 0x2d1   : > { %v1403_v61 = vrot.slane %v1374_v8, 4  ;;  %v1406_v19 = vsel %vm455_vm1, %v1374_v8, %v1405_v49  ;;  %v1416_v11 = vsel %vm455_vm1, %v1415_v17, %v1366_v62 }
 0x2d2   : > { %v1414_v1 = vperm.slane %v1406_v19, %v3370_v57  ;;  %v1422_v14 = vperm.slane %v1416_v11, %v3370_v57  ;;  %v1439_v3 = vrot.slane %v1426_v24, 4  ;;  %v4002_v48 = vsel %vm455_vm1, %v1426_v24, %v1441_v26 }
 0x2d3   : > { %v1404_v18 = vsel %vm455_vm1, %v1403_v61, %v1362_v63  ;;  %v1591_v44 = vrot.slane %v4002_v48, 4  ;;  %v1243_v6 = vrot.slane %v2804_v43, 4  ;;  %v1246_v12 = vsel %vm455_vm1, %v2804_v43, %v1245_v52 }
 0x2d4   : > { %v1410_v50 = vperm.slane %v1404_v18, %v3370_v57  ;;  %v1431_v32 = vrot.slane %v1414_v1, 4  ;;  %v4009_v45 = vsel %vm455_vm1, %v1414_v1, %v1433_v0  ;;  %v1435_v10 = vrot.slane %v1422_v14, 4 }
 0x2d5   : > { %v4012_v62 = vsel %vm455_vm1, %v1422_v14, %v1437_v22  ;;  %v4016_v35 = vsel %vm455_vm1, %v1439_v3, %v3949_v23  ;;  %v1567_v37 = vrot.slane %v4009_v45, 4  ;;  %v1244_v63 = vsel %vm455_vm1, %v1243_v6, %v2793_v21 }
 0x2d6   : > { %v1427_v56 = vrot.slane %v1410_v50, 4  ;;  %v1579_v26 = vrot.slane %v4016_v35, 4  ;;  %v1250_v55 = vperm.slane %v1244_v63, %v3341_v31  ;;  %v1254_v0 = vperm.slane %v1246_v12, %v3341_v31 }
 0x2d7   : > { %v1256_v38 = vsel %vm455_vm1, %v1255_v28, %v2803_v39  ;;  %v1257_v47 = vrot.slane %v2803_v39, 4  ;;  %v1430_v22 = vsel %vm455_vm1, %v1410_v50, %v1429_v13  ;;  %v1432_v23 = vsel %vm455_vm1, %v1431_v32, %v3937_v53 }
 0x2d8   : > { %v1293_v34 = vrot.slane %v1250_v55, 4  ;;  %v1305_v52 = vrot.slane %v1254_v0, 4  ;;  %v1262_v7 = vperm.slane %v1256_v38, %v3341_v31  ;;  %v1428_v21 = vsel %vm455_vm1, %v1427_v56, %v3956_v33 }
 0x2d9   : > { %v1258_v41 = vsel %vm455_vm1, %v2809_v58, %v1257_v47  ;;  %v1436_v49 = vsel %vm455_vm1, %v1435_v10, %v3944_v29  ;;  %v1555_v36 = vrot.slane %v1432_v23, 4  ;;  %v1568_v8 = vsel %vm455_vm1, %v1567_v37, %v1430_v22 }
 0x2da   : > { %v1266_v13 = vperm.slane %v1258_v41, %v3341_v31  ;;  %v1291_v17 = vrot.slane %v1262_v7, 4  ;;  %v1294_v53 = vsel %vm455_vm1, %v1262_v7, %v1293_v34  ;;  %v1574_v25 = vperm.slane %v1568_v8, %v3341_v31 }
 0x2db   : > { %v4038_v51 = vperm.slane %v1294_v53, %v3370_v57  ;;  %v1556_v33 = vsel %vm455_vm1, %v1555_v36, %v1428_v21  ;;  %v1580_v58 = vsel %vm455_vm1, %v1579_v26, %v1436_v49  ;;  %v1592_v29 = vsel %vm455_vm1, %v1591_v44, %v4012_v62 }
 0x2dc   : > { %v1292_v28 = vsel %vm455_vm1, %v1291_v17, %v1250_v55  ;;  %v1303_v24 = vrot.slane %v1266_v13, 4  ;;  %v1306_v43 = vsel %vm455_vm1, %v1266_v13, %v1305_v52  ;;  %v1562_v61 = vperm.slane %v1556_v33, %v3341_v31 }
 0x2dd   : > { %v1317_v19 = vrot.slane %v3988_v20, 4  ;;  %v1298_v11 = vperm.slane %v1292_v28, %v3370_v57  ;;  %v1314_v39 = vperm.slane %v1306_v43, %v3370_v57  ;;  %v4052_v1 = vsel %vm455_vm1, %v4038_v51, %v1321_v9 }
 0x2de   : > { %v1304_v14 = vsel %vm455_vm1, %v1303_v24, %v1254_v0  ;;  %v1319_v3 = vrot.slane %v4038_v51, 4  ;;  %v1586_v18 = vperm.slane %v1580_v58, %v3341_v31  ;;  %v1598_v44 = vperm.slane %v1592_v29, %v3341_v31 }
 0x2df   : > { %v1310_v6 = vperm.slane %v1304_v14, %v3370_v57  ;;  %v1315_v12 = vrot.slane %v1298_v11, 4  ;;  %v4062_v50 = vsel %vm455_vm1, %v1314_v39, %v1329_v16  ;;  %v1455_v32 = vrot.slane %v4052_v1, 4 }
 0x2e0   : > { %v1327_v9 = vrot.slane %v1314_v39, 4  ;;  %v1603_v10 = vrot.slane %v1574_v25, 4  ;;  %v1627_v37 = vrot.slane %v1598_v44, 4  ;;  %v1605_v63 = vrot.slane %v1562_v61, 4 }
 0x2e1   : > { %v1323_v56 = vrot.slane %v1310_v6, 4  ;;  %v1479_v26 = vrot.slane %v4062_v50, 4  ;;  %v1629_v55 = vrot.slane %v1586_v18, 4  ;;  %v1557_v0 = vrot.slane %v1428_v21, 4 }
 0x2e2   : > { %v4069_v38 = vsel %vm455_vm1, %v1310_v6, %v1325_v40  ;;  %v1604_v47 = vsel %vm455_vm1, %v1603_v10, %v1562_v61  ;;  %v1628_v16 = vsel %vm455_vm1, %v1627_v37, %v1586_v18  ;;  %v1606_v34 = vsel %vm455_vm1, %v1574_v25, %v1605_v63 }
 0x2e3   : > { %v1610_v52 = vperm.slane %v1604_v47, %v3370_v57  ;;  %v1634_v7 = vperm.slane %v1628_v16, %v3370_v57  ;;  %v1614_v41 = vperm.slane %v1606_v34, %v3370_v57  ;;  %v1630_v36 = vsel %vm455_vm1, %v1598_v44, %v1629_v55 }
 0x2e4   : > { %v1638_v21 = vperm.slane %v1630_v36, %v3370_v57  ;;  %v1558_v8 = vsel %vm455_vm1, %v1432_v23, %v1557_v0  ;;  %v1569_v40 = vrot.slane %v1430_v22, 4  ;;  %v1581_v13 = vrot.slane %v1436_v49, 4 }
 0x2e5   : > { %v1651_v17 = vrot.slane %v1634_v7, 4  ;;  %v4081_v53 = vperm.slane %v1558_v8, %v3341_v31  ;;  %v1593_v25 = vrot.slane %v4012_v62, 4  ;;  %v1657_v51 = vrot.slane %v1614_v41, 4 }
 0x2e6   : > { %v1481_v33 = vrot.slane %v4069_v38, 4  ;;  %v1655_v58 = vrot.slane %v1638_v21, 4  ;;  %v1570_v29 = vsel %vm455_vm1, %v4009_v45, %v1569_v40  ;;  %v1582_v28 = vsel %vm455_vm1, %v4016_v35, %v1581_v13 }
 0x2e7   : > { %v1652_v23 = vsel %vm455_vm1, %v1651_v17, %v1610_v52  ;;  %v4091_v22 = vperm.slane %v1570_v29, %v3341_v31  ;;  %v1594_v49 = vsel %vm455_vm1, %v4002_v48, %v1593_v25  ;;  %v1316_v62 = vsel %vm455_vm1, %v1315_v12, %v3988_v20 }
 0x2e8   : > { %2006 = vmatpush.msrb.mxu2 %v1652_v23  ;;  %v1656_v24 = vsel %vm455_vm1, %v1655_v58, %v1614_v41  ;;  %v4099_v43 = vperm.slane %v1582_v28, %v3341_v31  ;;  %v4102_v45 = vperm.slane %v1594_v49, %v3341_v31  ;;  %v1658_v35 = vsel %vm455_vm1, %v1638_v21, %v1657_v51 }
 0x2e9   : > { %2052 = vmatpush.msrb.mxu3 %v1656_v24  ;;  %v1615_v61 = vrot.slane %v4091_v22, 4  ;;  %v1617_v39 = vrot.slane %v4081_v53, 4  ;;  %2075 = vmatpush.msrb.mxu0 %v1658_v35  ;;  %v1318_v48 = vsel %vm455_vm1, %v1298_v11, %v1317_v19  ;;  %v1320_v20 = vsel %vm455_vm1, %v1319_v3, %v3976_v30 }
 0x2ea   : > { %v1639_v14 = vrot.slane %v4102_v45, 4  ;;  %v1324_v18 = vsel %vm455_vm1, %v1323_v56, %v3981_v42  ;;  %v1328_v44 = vsel %vm455_vm1, %v1327_v9, %v3969_v54  ;;  %v1443_v6 = vrot.slane %v1320_v20, 4 }
 0x2eb   : > { %v1616_v12 = vsel %vm455_vm1, %v1615_v61, %v4081_v53  ;;  %v1456_v10 = vsel %vm455_vm1, %v1455_v32, %v1318_v48  ;;  %v1467_v37 = vrot.slane %v1328_v44, 4  ;;  %v1480_v19 = vsel %vm455_vm1, %v1479_v26, %v4069_v38 }
 0x2ec   : > { %v4121_v30 = vperm.slane %v1616_v12, %v3370_v57  ;;  %v1640_v11 = vsel %vm455_vm1, %v1639_v14, %v4099_v43  ;;  %v1444_v42 = vsel %vm455_vm1, %v1443_v6, %v1316_v62  ;;  %v1462_v54 = vperm.slane %v1456_v10, %v3341_v31 }
 0x2ed   : > { %v4128_v3 = vperm.slane %v1640_v11, %v3370_v57  ;;  %v1450_v9 = vperm.slane %v1444_v42, %v3341_v31  ;;  %v1468_v32 = vsel %vm455_vm1, %v1467_v37, %v1324_v18  ;;  %v1486_v63 = vperm.slane %v1480_v19, %v3341_v31 }
 0x2ee   : > { %v1641_v56 = vrot.slane %v4099_v43, 4  ;;  %v1474_v26 = vperm.slane %v1468_v32, %v3341_v31  ;;  %v1491_v55 = vrot.slane %v1462_v54, 4  ;;  %v1653_v0 = vrot.slane %v1610_v52, 4 }
 0x2ef   : > { %v1659_v47 = vrot.slane %v4128_v3, 4  ;;  %v1515_v16 = vrot.slane %v1486_v63, 4  ;;  %v1493_v34 = vrot.slane %v1450_v9, 4  ;;  %v1445_v41 = vrot.slane %v1316_v62, 4 }
 0x2f0   : > { %v1492_v36 = vsel %vm455_vm1, %v1491_v55, %v1450_v9  ;;  %v1654_v21 = vsel %vm455_vm1, %v1634_v7, %v1653_v0  ;;  %v1517_v8 = vrot.slane %v1474_v26, 4  ;;  %v1457_v40 = vrot.slane %v1318_v48, 4 }
 0x2f1   : > { %v1660_v13 = vsel %vm455_vm1, %v1659_v47, %v4121_v30  ;;  %v1498_v17 = vperm.slane %v1492_v36, %v3370_v57  ;;  %v1516_v53 = vsel %vm455_vm1, %v1515_v16, %v1474_v26  ;;  %v1494_v52 = vsel %vm455_vm1, %v1462_v54, %v1493_v34 }
 0x2f2   : > { %2098 = vmatpush.msrb.mxu1 %v1660_v13  ;;  %v1522_v25 = vperm.slane %v1516_v53, %v3370_v57  ;;  %v1502_v51 = vperm.slane %v1494_v52, %v3370_v57  ;;  %v1518_v58 = vsel %vm455_vm1, %v1486_v63, %v1517_v8  ;;  %v1446_v7 = vsel %vm455_vm1, %v1320_v20, %v1445_v41 }
 0x2f3   : > { %v1526_v29 = vperm.slane %v1518_v58, %v3370_v57  ;;  %v1454_v28 = vperm.slane %v1446_v7, %v3341_v31  ;;  %v1458_v23 = vsel %vm455_vm1, %v4052_v1, %v1457_v40  ;;  %v1469_v49 = vrot.slane %v1324_v18, 4 }
 0x2f4   : > { %v1539_v62 = vrot.slane %v1522_v25, 4  ;;  %v1466_v24 = vperm.slane %v1458_v23, %v3341_v31  ;;  %v1482_v43 = vsel %vm455_vm1, %v4062_v50, %v1481_v33  ;;  %v1541_v35 = vrot.slane %v1498_v17, 4 }
 0x2f5   : > { %v1543_v61 = vrot.slane %v1526_v29, 4  ;;  %v1470_v48 = vsel %vm455_vm1, %v1328_v44, %v1469_v49  ;;  %v1490_v20 = vperm.slane %v1482_v43, %v3341_v31  ;;  %v1618_v14 = vsel %vm455_vm1, %v4091_v22, %v1617_v39 }
 0x2f6   : > { %v1540_v1 = vsel %vm455_vm1, %v1539_v62, %v1498_v17  ;;  %v1478_v18 = vperm.slane %v1470_v48, %v3341_v31  ;;  %v1503_v6 = vrot.slane %v1466_v24, 4  ;;  %v1542_v12 = vsel %vm455_vm1, %v1522_v25, %v1541_v35 }
 0x2f7   : > { %2007 = vmatpush.msrb.mxu2 %v1540_v1  ;;  %v1544_v38 = vsel %vm455_vm1, %v1543_v61, %v1502_v51  ;;  %v1527_v50 = vrot.slane %v1490_v20, 4  ;;  %v1626_v33 = vperm.slane %v1618_v14, %v3370_v57  ;;  %v1642_v44 = vsel %vm455_vm1, %v4102_v45, %v1641_v56 }
 0x2f8   : > { %2053 = vmatpush.msrb.mxu3 %v1544_v38  ;;  %v1650_v22 = vperm.slane %v1642_v44, %v3370_v57  ;;  %v1545_v39 = vrot.slane %v1502_v51, 4  ;;  %v1505_v10 = vrot.slane %v1454_v28, 4  ;;  %v1504_v37 = vsel %vm455_vm1, %v1503_v6, %v1454_v28 }
 0x2f9   : > { %2029 = vmatpush.msra.mxu2 %v1654_v21  ;;  %v1528_v19 = vsel %vm455_vm1, %v1527_v50, %v1478_v18  ;;  %v1529_v11 = vrot.slane %v1478_v18, 4  ;;  %v1665_v42 = vrot.slane %v1626_v33, 4  ;;  %v1510_v55 = vperm.slane %v1504_v37, %v3370_v57 }
 0x2fa   : > { %v1534_v54 = vperm.slane %v1528_v19, %v3370_v57  ;;  %v1663_v9 = vrot.slane %v1650_v22, 4  ;;  %v1546_v32 = vsel %vm455_vm1, %v1526_v29, %v1545_v39  ;;  %v1506_v45 = vsel %vm455_vm1, %v1466_v24, %v1505_v10 }
 0x2fb   : > { %2030 = vmatpush.msra.mxu2 %v1542_v12  ;;  %2076 = vmatpush.msrb.mxu0 %v1546_v32  ;;  %v1514_v63 = vperm.slane %v1506_v45, %v3370_v57  ;;  %v1530_v56 = vsel %vm455_vm1, %v1490_v20, %v1529_v11  ;;  %v1666_v26 = vsel %vm455_vm1, %v1650_v22, %v1665_v42  ;;  %v1661_v13 = vrot.slane %v4121_v30, 4 }
 0x2fc   : > { %v1547_v0 = vrot.slane %v1534_v54, 4  ;;  %v1664_v47 = vsel %vm455_vm1, %v1663_v9, %v1626_v33  ;;  %v1538_v16 = vperm.slane %v1530_v56, %v3370_v57  ;;  %v1549_v25 = vrot.slane %v1510_v55, 4 }
 0x2fd   : > { %2167 = vmatpush.msra.mxu0 %v1666_v26  ;;  %2144 = vmatpush.msra.mxu3 %v1664_v47  ;;  %v1553_v34 = vrot.slane %v1514_v63, 4  ;;  %v1662_v58 = vsel %vm455_vm1, %v4128_v3, %v1661_v13 }
 0x2fe   : > { %v1548_v41 = vsel %vm455_vm1, %v1547_v0, %v1510_v55  ;;  %v1551_v36 = vrot.slane %v1538_v16, 4  ;;  %v1550_v7 = vsel %vm455_vm1, %v1534_v54, %v1549_v25 }
 0x2ff   : > { %2099 = vmatpush.msrb.mxu1 %v1548_v41  ;;  %v1554_v21 = vsel %vm455_vm1, %v1538_v16, %v1553_v34 }
 0x300   : > { %v1552_v8 = vsel %vm455_vm1, %v1551_v36, %v1514_v63  ;;  %2168 = vmatpush.msra.mxu0 %v1554_v21 }
 0x301   : > { %2145 = vmatpush.msra.mxu3 %v1552_v8 }
 0x324   : > { %v1951_v40 = vpop.xlane.xlu2 %1950 }
 0x325   : > { %2827 = vrcp.f32 %v1951_v40 }
 0x32b   : > { %v2828_v17 = vpop.eup %2827 }
 0x32c   : > { %v1954_v53 = vpop.xlane.xlu0 %1953  ;;  %v1981_v52 = vmul.f32 %v2828_v17, %v3887_v59 }
 0x32d   : > { %2829 = vrcp.f32 %v1954_v53 }
 0x32e   : > { %2655 = vmatmul.msk.f32.vlgmr.msrb.gmra.mxu2 %vm1900_vm3, %v1981_v52 }
 0x32f   : > { %v1957_v51 = vpop.xlane.xlu1 %1956  ;;  %2121 = vmatpush.msrb.mxu2 %v1662_v58 }
 0x330   : > { %2831 = vrcp.f32 %v1957_v51 }
 0x331   : > { %2122 = vmatpush.msrb.mxu2 %v1550_v7 }
 0x333   : > { %v2830_v29 = vpop.eup %2829 }
 0x334   : > { %v1960_v28 = vpop.xlane.xlu2 %1959  ;;  %v1982_v30 = vmul.f32 %v2830_v29, %v3894_v4 }
 0x335   : > { %2833 = vrcp.f32 %v1960_v28 }
 0x336   : > { %v2832_v23 = vpop.eup %2831  ;;  %2656 = vmatmul.msk.f32.vlgmr.msra.gmra.mxu2 %vm1900_vm3, %v1982_v30 }
 0x337   : > { %v1983_v59 = vmul.f32 %v2832_v23, %v3904_v27  ;;  %v1966_v49 = vpop.xlane.xlu0 %1965  ;;  %v1969_v62 = vpop.xlane.xlu1 %1968 }
 0x338   : > { %2835 = vrcp.f32 %v1966_v49 }
 0x339   : > { %2837 = vrcp.f32 %v1969_v62  ;;  %2657 = vmatmul.msk.f32.vlgmr.msrb.gmra.mxu3 %vm1900_vm3, %v1983_v59 }
 0x33b   : > { %v2834_v3 = vpop.eup %2833 }
 0x33c   : > { %v1984_v24 = vmul.f32 %v2834_v3, %v3915_v60  ;;  %v1963_v43 = vpop.xlane.xlu2 %1962 }
 0x33d   : > { %2839 = vrcp.f32 %v1963_v43 }
 0x33e   : > { %v2836_v35 = vpop.eup %2835  ;;  %2658 = vmatmul.msk.f32.vlgmr.msrb.gmra.mxu0 %vm1900_vm3, %v1984_v24 }
 0x33f   : > { %v2838_v4 = vpop.eup %2837  ;;  %v1986_v61 = vmul.f32 %v2836_v35, %v3927_v5  ;;  %v1972_v27 = vpop.xlane.xlu1 %1971 }
 0x340   : > { %v1987_v48 = vmul.f32 %v2838_v4, %v3922_v2  ;;  %2841 = vrcp.f32 %v1972_v27 }
 0x341   : > { %2660 = vmatmul.msk.f32.vlgmr.msrb.gmra.mxu2 %vm1900_vm3, %v1986_v61 }
 0x342   : > { %2661 = vmatmul.msk.f32.vlgmr.msra.gmra.mxu3 %vm1900_vm3, %v1987_v48 }
 0x343   : > { %v2840_v20 = vpop.eup %2839 }
 0x344   : > { %v1985_v14 = vmul.f32 %v2840_v20, %v3940_v46 }
 0x346   : > { %v2842_v60 = vpop.eup %2841  ;;  %2659 = vmatmul.msk.f32.vlgmr.msrb.gmra.mxu1 %vm1900_vm3, %v1985_v14 }
 0x347   : > { %v1988_v1 = vmul.f32 %v2842_v60, %v3953_v15 }
 0x349   : > { %2662 = vmatmul.msk.f32.vlgmr.msra.gmra.mxu0 %vm1900_vm3, %v1988_v1 }
 0x3b1   : > { %v2009_v18 = vpop.f32.mrf.mxu2 }
 0x3b2   : > { %v2175_v6 = vrot.slane %v2009_v18, 4 }
 0x3b9   : > { %v2032_v5 = vpop.f32.mrf.mxu2 }
 0x3ba   : > { %v2187_v2 = vrot.slane %v2032_v5, 4 }
 0x3bb   : > { %v2078_v12 = vpop.f32.mrf.mxu0 }
 0x3bc   : > { %v2185_v38 = vrot.slane %v2078_v12, 4  ;;  %v2055_v50 = vpop.f32.mrf.mxu3  ;;  %v2188_v33 = vsel %vm455_vm1, %v2078_v12, %v2187_v2 }
 0x3bd   : > { %v2173_v44 = vrot.slane %v2055_v50, 4  ;;  %v2176_v22 = vsel %vm455_vm1, %v2055_v50, %v2175_v6  ;;  %v2196_v39 = vperm.slane %v2188_v33, %v3341_v31 }
 0x3be   : > { %v2186_v46 = vsel %vm455_vm1, %v2185_v38, %v2032_v5  ;;  %v2184_v15 = vperm.slane %v2176_v22, %v3341_v31 }
 0x3bf   : > { %v2192_v10 = vperm.slane %v2186_v46, %v3341_v31  ;;  %v2174_v37 = vsel %vm455_vm1, %v2173_v44, %v2009_v18  ;;  %v2233_v19 = vrot.slane %v2196_v39, 4 }
 0x3c0   : > { %v2180_v11 = vperm.slane %v2174_v37, %v3341_v31  ;;  %v2235_v54 = vrot.slane %v2184_v15, 4 }
 0x3c1   : > { %v2221_v42 = vrot.slane %v2192_v10, 4  ;;  %v2234_v45 = vsel %vm455_vm1, %v2233_v19, %v2184_v15 }
 0x3c2   : > { %v2223_v9 = vrot.slane %v2180_v11, 4  ;;  %v2236_v55 = vsel %vm455_vm1, %v2196_v39, %v2235_v54  ;;  %v2240_v21 = vperm.slane %v2234_v45, %v3370_v57 }
 0x3c3   : > { %v2101_v32 = vpop.f32.mrf.mxu1  ;;  %v2222_v26 = vsel %vm455_vm1, %v2221_v42, %v2180_v11  ;;  %v2244_v53 = vperm.slane %v2236_v55, %v3370_v57 }
 0x3c4   : > { %v2199_v63 = vrot.slane %v2101_v32, 4  ;;  %v2124_v56 = vpop.f32.mrf.mxu2  ;;  %v2224_v16 = vsel %vm455_vm1, %v2192_v10, %v2223_v9  ;;  %v2228_v17 = vperm.slane %v2222_v26, %v3370_v57  ;;  %v2279_v23 = vrot.slane %v2240_v21, 4 }
 0x3c5   : > { %v2211_v0 = vrot.slane %v2124_v56, 4  ;;  %v2147_v47 = vpop.f32.mrf.mxu3  ;;  %v2232_v51 = vperm.slane %v2224_v16, %v3370_v57  ;;  %v2283_v62 = vrot.slane %v2244_v53, 4 }
 0x3c6   : > { %v2197_v34 = vrot.slane %v2147_v47, 4  ;;  %v2200_v41 = vsel %vm455_vm1, %v2147_v47, %v2199_v63  ;;  %v2170_v36 = vpop.f32.mrf.mxu0  ;;  %v2271_v35 = vrot.slane %v2228_v17, 4 }
 0x3c7   : > { %v2208_v8 = vperm.slane %v2200_v41, %v3341_v31  ;;  %v2209_v40 = vrot.slane %v2170_v36, 4  ;;  %v2212_v13 = vsel %vm455_vm1, %v2170_v36, %v2211_v0  ;;  %v2275_v4 = vrot.slane %v2232_v51, 4 }
 0x3c8   : > { %v2198_v52 = vsel %vm455_vm1, %v2197_v34, %v2101_v32  ;;  %v2220_v25 = vperm.slane %v2212_v13, %v3341_v31 }
 0x3c9   : > { %v2204_v58 = vperm.slane %v2198_v52, %v3341_v31  ;;  %v2259_v7 = vrot.slane %v2208_v8, 4  ;;  %v2210_v29 = vsel %vm455_vm1, %v2209_v40, %v2124_v56 }
 0x3ca   : > { %v2216_v28 = vperm.slane %v2210_v29, %v3341_v31  ;;  %v2257_v30 = vrot.slane %v2220_v25, 4 }
 0x3cb   : > { %v2247_v59 = vrot.slane %v2204_v58, 4  ;;  %v2260_v49 = vsel %vm455_vm1, %v2220_v25, %v2259_v7 }
 0x3cc   : > { %v2245_v3 = vrot.slane %v2216_v28, 4  ;;  %v2258_v24 = vsel %vm455_vm1, %v2257_v30, %v2208_v8  ;;  %v2268_v43 = vperm.slane %v2260_v49, %v3370_v57 }
 0x3cd   : > { %v2248_v61 = vsel %vm455_vm1, %v2216_v28, %v2247_v59  ;;  %v2264_v27 = vperm.slane %v2258_v24, %v3370_v57 }
 0x3ce   : > { %v2246_v48 = vsel %vm455_vm1, %v2245_v3, %v2204_v58  ;;  %v2256_v20 = vperm.slane %v2248_v61, %v3370_v57  ;;  %v2281_v14 = vrot.slane %v2268_v43, 4  ;;  %v2284_v60 = vsel %vm455_vm1, %v2268_v43, %v2283_v62 }
 0x3cf   : > { %v2252_v1 = vperm.slane %v2246_v48, %v3370_v57  ;;  %v2277_v18 = vrot.slane %v2264_v27, 4  ;;  %v2280_v5 = vsel %vm455_vm1, %v2264_v27, %v2279_v23  ;;  %v2321_v6 = vrot.slane %v2284_v60, 4 }
 0x3d0   : > { %v2273_v12 = vrot.slane %v2256_v20, 4  ;;  %v2276_v2 = vsel %vm455_vm1, %v2256_v20, %v2275_v4  ;;  %v2282_v38 = vsel %vm455_vm1, %v2281_v14, %v2244_v53  ;;  %v2323_v50 = vrot.slane %v2280_v5, 4 }
 0x3d1   : > { %v2269_v33 = vrot.slane %v2252_v1, 4  ;;  %v2272_v44 = vsel %vm455_vm1, %v2252_v1, %v2271_v35  ;;  %v2278_v22 = vsel %vm455_vm1, %v2277_v18, %v2240_v21  ;;  %v2297_v46 = vrot.slane %v2276_v2, 4 }
 0x3d2   : > { %v2299_v39 = vrot.slane %v2272_v44, 4  ;;  %v2309_v15 = vrot.slane %v2282_v38, 4  ;;  %v2311_v10 = vrot.slane %v2278_v22, 4  ;;  %v2324_v37 = vsel %vm455_vm1, %v2284_v60, %v2323_v50 }
 0x3d3   : > { %v2270_v19 = vsel %vm455_vm1, %v2269_v33, %v2228_v17  ;;  %v2274_v11 = vsel %vm455_vm1, %v2273_v12, %v2232_v51  ;;  %v2332_v42 = vperm.slane %v2324_v37, %v3341_v31  ;;  %v2298_v54 = vsel %vm455_vm1, %v2297_v46, %v2272_v44  ;;  %v2440_v37 = vld [vmem:[#allocation10 + $0x18] sm:$0xff] }
 0x3d4   : > { %v2285_v9 = vrot.slane %v2274_v11, 4  ;;  %v2287_v32 = vrot.slane %v2270_v19, 4  ;;  %v2300_v45 = vsel %vm455_vm1, %v2276_v2, %v2299_v39  ;;  %v2312_v63 = vsel %vm455_vm1, %v2282_v38, %v2311_v10  ;;  %v2443_v39 = vld [vmem:[#allocation10 + $0x30] sm:$0xff]  ;;  %v2441_v10 = vld [vmem:[#allocation10 + $0x20] sm:$0xff] }
 0x3d5   : > { %v2308_v56 = vperm.slane %v2300_v45, %v3341_v31  ;;  %v2320_v26 = vperm.slane %v2312_v63, %v3341_v31  ;;  %v2369_v55 = vrot.slane %v2332_v42, 4  ;;  %v2304_v0 = vperm.slane %v2298_v54, %v3341_v31 }
 0x3d6   : > { %v2288_v47 = vsel %vm455_vm1, %v2274_v11, %v2287_v32  ;;  %v2286_v16 = vsel %vm455_vm1, %v2285_v9, %v2270_v19  ;;  %v2310_v34 = vsel %vm455_vm1, %v2309_v15, %v2278_v22  ;;  %v2322_v41 = vsel %vm455_vm1, %v2321_v6, %v2280_v5  ;;  %v2442_v15 = vld [vmem:[#allocation10 + $0x28] sm:$0xff]  ;;  %v2439_v19 = vld [vmem:[#allocation10 + $0x10] sm:$0xff] }
 0x3d7   : > { %v2296_v36 = vperm.slane %v2288_v47, %v3341_v31  ;;  %v2345_v21 = vrot.slane %v2308_v56, 4  ;;  %v2370_v8 = vsel %vm455_vm1, %v2369_v55, %v2320_v26  ;;  %v2292_v40 = vperm.slane %v2286_v16, %v3341_v31  ;;  %v2438_v11 = vld [vmem:[#allocation10 + $0x8] sm:$0xff] }
 0x3d8   : > { %v2376_v13 = vperm.slane %v2370_v8, %v3370_v57  ;;  %v2316_v17 = vperm.slane %v2310_v34, %v3341_v31  ;;  %v2328_v53 = vperm.slane %v2322_v41, %v3341_v31  ;;  %v2333_v52 = vrot.slane %v2304_v0, 4 }
 0x3d9   : > { %v2346_v25 = vsel %vm455_vm1, %v2345_v21, %v2296_v36  ;;  %v2335_v51 = vrot.slane %v2292_v40, 4  ;;  %v2347_v58 = vrot.slane %v2296_v36, 4  ;;  %v2371_v4 = vrot.slane %v2320_v26, 4  ;;  %v2810_v21 = vld [vmem:[%s4329_s5] ss:$0 sm:$0xff] }
 0x3da   : > { %v2352_v7 = vperm.slane %v2346_v25, %v3370_v57  ;;  %v2389_v29 = vrot.slane %v2376_v13, 4  ;;  %v2359_v28 = vrot.slane %v2316_v17, 4  ;;  %v2334_v30 = vsel %vm455_vm1, %v2333_v52, %v2292_v40 }
 0x3db   : > { %v2336_v23 = vsel %vm455_vm1, %v2304_v0, %v2335_v51  ;;  %v2357_v59 = vrot.slane %v2328_v53, 4  ;;  %v2340_v3 = vperm.slane %v2334_v30, %v3370_v57  ;;  %v2348_v35 = vsel %vm455_vm1, %v2308_v56, %v2347_v58 }
 0x3dc   : > { %v2390_v49 = vsel %vm455_vm1, %v2389_v29, %v2352_v7  ;;  %v2344_v62 = vperm.slane %v2336_v23, %v3370_v57  ;;  %v2360_v31 = vsel %vm455_vm1, %v2328_v53, %v2359_v28  ;;  %v2356_v60 = vperm.slane %v2348_v35, %v3370_v57 }
 0x3dd   : > { %2410 = vrot.lane.b32.xlu0 %v2390_v49, %s3088_s30  ;;  %v2368_v24 = vperm.slane %v2360_v31, %v3370_v57  ;;  %v2358_v43 = vsel %vm455_vm1, %v2357_v59, %v2316_v17  ;;  %v2383_v14 = vrot.slane %v2340_v3, 4  ;;  %v2372_v18 = vsel %vm455_vm1, %v2332_v42, %v2371_v4  ;;  %v2437_v42 = vld [vmem:[#allocation10] sm:$0xff]  ;;  %s3009_s30 = scalar_lea.hbm %s3008_s20, 8 }
 0x3de   : > { %v2387_v61 = vrot.slane %v2344_v62, 4  ;;  %v2364_v27 = vperm.slane %v2358_v43, %v3370_v57  ;;  %v2380_v12 = vperm.slane %v2372_v18, %v3370_v57  ;;  %v2395_v2 = vrot.slane %v2356_v60, 4  ;;  %v2444_v57 = vld [vmem:[#allocation10 + $0x38] sm:$0xff]  ;;  %p3010_p1 = scmp.ne.s32.totalorder %s3008_s20, %s3009_s30  ;;  %p3015_p9 = scmp.lt.s32.totalorder %s3013_s17, %s3009_s30 }
 0x3df   : > { %v2385_v48 = vrot.slane %v2368_v24, 4  ;;  %v2391_v38 = vrot.slane %v2352_v7, 4  ;;  %2460 = vmatpush.msra.mxu1 %v2444_v57 }
 0x3e0   : > { %v2388_v20 = vsel %vm455_vm1, %v2368_v24, %v2387_v61  ;;  %v2381_v5 = vrot.slane %v2364_v27, 4  ;;  %v2384_v6 = vsel %vm455_vm1, %v2364_v27, %v2383_v14  ;;  %v2396_v33 = vsel %vm455_vm1, %v2380_v12, %v2395_v2  ;;  %p3011_p3 = pnand %p3010_p1, %p3219_p0  ;;  %p3016_p8 = por %p3015_p9, %p3014_p7 }
 0x3e1   : > { %v2386_v1 = vsel %vm455_vm1, %v2385_v48, %v2344_v62  ;;  %2406 = vrot.lane.b32.xlu1 %v2388_v20, %s3089_s18  ;;  %v2393_v44 = vrot.slane %v2380_v12, 4  ;;  %v2392_v22 = vsel %vm455_vm1, %v2376_v13, %v2391_v38  ;;  %2461 = vmatpush.msra.mxu1 %v2443_v39 }
 0x3e2   : > { %2402 = vrot.lane.b32.xlu2 %v2386_v1, %s3090_s19  ;;  %v2382_v50 = vsel %vm455_vm1, %v2381_v5, %v2340_v3  ;;  %p3012_p13 = pneg %p3011_p3 }
 0x3e3   : > { %v2394_v46 = vsel %vm455_vm1, %v2393_v44, %v2356_v60  ;;  %2462 = vmatpush.msra.mxu1 %v2442_v15 }
 0x3e4   : > { %p3017_p5 = pnand %p3016_p8, %p3012_p13 }
 0x3e5   : > { %2398 = vrot.lane.b32.xlu0 %v2384_v6, %s3091_s11  ;;  %2463 = vmatpush.msra.mxu1 %v2441_v10 }
 0x3e7   : > { %2464 = vmatpush.msra.mxu1 %v2440_v37 }
 0x3e9   : > { %2422 = vrot.lane.b32.xlu1 %v2396_v33, %s3092_s27  ;;  %2465 = vmatpush.msra.mxu1 %v2439_v19 }
 0x3ea   : > { %2414 = vrot.lane.b32.xlu2 %v2392_v22, %s3093_s3 }
 0x3eb   : > { %2466 = vmatpush.msra.mxu1 %v2438_v11 }
 0x3ed   : > { %2418 = vrot.lane.b32.xlu0 %v2394_v46, %s3094_s29  ;;  %2467 = vmatpush.msra.mxu1 %v2437_v42 }
 0x43c   : > { %v2403_v9 = vpop.permute.xlu2 %2402 }
 0x444   : > { %v2415_v0 = vpop.permute.xlu2 %2414 }
 0x44f   : > { %v2411_v54 = vpop.permute.xlu0 %2410 }
 0x453   : > { %v2407_v32 = vpop.permute.xlu1 %2406 }
 0x457   : > { %v2399_v45 = vpop.permute.xlu0 %2398 }
 0x458   : > { %v2425_v63 = vsel %vm1667_vm2, %v2382_v50, %v2399_v45 }
 0x459   : > { %v2426_v56 = vsel %vm1900_vm3, %v2425_v63, %v2403_v9 }
 0x45a   : > { %v2428_v26 = vsel %vm2427_vm4, %v2426_v56, %v2407_v32 }
 0x45b   : > { %v2430_v55 = vsel %vm2429_vm5, %v2428_v26, %v2411_v54  ;;  %v2423_v34 = vpop.permute.xlu1 %2422 }
 0x45c   : > { %v2432_v16 = vsel %vm2431_vm6, %v2430_v55, %v2415_v0 }
 0x45f   : > { %v2419_v47 = vpop.permute.xlu0 %2418 }
 0x460   : > { %v2434_v41 = vsel %vm2433_vm7, %v2432_v16, %v2419_v47 }
 0x461   : > { %v2436_v36 = vsel %vm2435_vm8, %v2434_v41, %v2423_v34 }
 0x462   : > { %2663 = vmatmul.msk.f32.vlgmr.msra.gmra.mxu1 %vm371_vm0, %v2436_v36 }
 0x4df   : > { %v2469_v8 = vpop.f32.mrf.mxu1 }
 0x4e0   : > { %v2470_v40 = vadd.f32 %v2810_v21, %v2469_v8 }
 0x4e2   : > { %2472 = vst.msk [vmem:[%s359_s14] sm:$0xff] %vm371_vm0, %v2470_v40 }
 0x4e3   : > { %3020 = shalt.err (!%p3017_p5)
}
 0x4e4   : > { %2685 = dma.vmem_to_hbm [thread:$0]  (%p3219_p0), %s2487_s15, 128, %s2489_s4, %s2474_s28  }
 0x4e5 PF: > { %s2500_s2 = sand.u32 1, %s3059_s21   ;;  %p4349_p10 = scmp.ge.s32.totalorder %s3071_s24, 2 }
 0x4e6   : > { %s2501_s3 = scalar_lea.sflag [#allocation4], %s2500_s2 }
 0x4e7   : > { %p2705_p11 = pnand %p4349_p10, %p3227_p6 }
 0x4e9   : > { %p2706_p12 = pneg %p2705_p11 }
 0x4eb   : > { %3054 = dma.done.wait (%p2706_p12), %s2501_s3, 128  }
 0x4ec   : > { %3056 = vsyncadd (%p2706_p12), %s2501_s3, 4294967168  ;;  %s4350_s29 = sld [smem:[#allocation17_spill]]  ;;  %p23_p2 = scmp.ge.s32.totalorder %s3195_s26, 4  }
 0x4ed   : > { %s4351_s21 = smov %s3063_s22  ;;  %s4352_s22 = smov %s3067_s23 }
 0x4ee   : > { %s4354_s24 = smov %s3195_s26  ;;  %25 = sbr.rel (!%p23_p2) target bundleno = 12 (0xc), region = 114 }
 0x4f2   : > { %s4353_s23 = smov %s4350_s29 }
 0x4f3   :  { %2507 = vsyncpa [#allocation3], 1 }
 0x4f4   :  { %2509 = vsyncpa [#allocation3 + $0x1], 1 }
 0x4f5   :  { %2510 = vsyncpa [#allocation6], 1 }
 0x4f6   :  { %2512 = vsyncpa [#allocation6 + $0x1], 1 }
 0x4f7   :  { %2513 = vsyncpa [#allocation9], 1 }
 0x4f8   :  { %2514 = vsyncpa [#allocation4], 1 }
 0x4f9   :  { %2516 = vsyncpa [#allocation4 + $0x1], 1 }

</bundles_post_ra>
